<compile_context>
chip_gen: v7x
topology: tpu7x:2x2x1
jax: 0.10.0
libtpu: 0.0.40
codegen_flags: <defaults>
</compile_context>

<pallas_src>
import math

import jax
import jax.numpy as jnp
from jax import lax
from jax.experimental import pallas as pl
from jax.experimental.pallas import tpu as pltpu

# ---- synthetic "klue/roberta-base" config, shrunk to small shapes ----
B = 2          # per-branch batch
S = 8          # sequence length (<= 512 in the real model)
H = 32         # hidden size
NH = 2         # attention heads
DH = H // NH   # head dim
F = 64         # FFN intermediate
V = 128        # vocab size (incl. the added <SEP> token)
NUM_LAYERS = 2
LN_EPS = 1e-5
QKV_PAD = ((3 * H + 127) // 128) * 128   # fused Q|K|V output width, 128-lane padded
TV = 128                                  # vocab tile width for the MLM decoder
VMEM_LIMIT = 32 * 1024 * 1024             # TODO(synk): re-derive per generation at real scale


def _layer_norm(x, g, b):
    mu = jnp.mean(x, axis=-1, keepdims=True)
    var = jnp.mean(jnp.square(x - mu), axis=-1, keepdims=True)
    return (x - mu) * lax.rsqrt(var + LN_EPS) * g + b


# ----------------------------- Pallas kernels -----------------------------

def _encoder_layer_kernel(x_ref, mask_ref, eg_ref, eb_ref,
                          wqkv_ref, bqkv_ref, wo_ref, bo_ref,
                          ln1g_ref, ln1b_ref, w1_ref, b1_ref,
                          w2_ref, b2_ref, ln2g_ref, ln2b_ref,
                          o_ref, h_ref):
    """One post-LN RoBERTa layer per grid step.

    grid = (branch_blocks ["parallel"], NUM_LAYERS ["arbitrary"]).
    x_ref:    [nb*S, H]  token+pos embeddings for the examples of this block
    mask_ref: [nb, 1, S] (1.0 = attend, 0.0 = padding)
    weight refs carry a leading size-1 streamed layer axis (index with [0]).
    h_ref:    VMEM scratch [nb*S, H] f32 — the resident hidden state.
    """
    l = pl.program_id(1)
    nb = mask_ref.shape[0]                       # examples in this block (static)
    scale = 1.0 / math.sqrt(DH)

    # Layer 0: embeddings LayerNorm seeds the resident hidden state.
    @pl.when(l == 0)
    def _():
        h_ref[...] = _layer_norm(x_ref[...], eg_ref[...], eb_ref[...])

    h = h_ref[...]                               # [nb*S, H] f32

    # Additive attention-mask bias (tiny elementwise op, recomputed per layer step).
    bias = (mask_ref[...] - 1.0) * 1e9           # [nb, 1, S] -> broadcasts to [nb,S,S]

    # Fused Q|K|V projection: bf16 operands, f32 accumulation, 128-lane padded N.
    qkv = jnp.dot(h.astype(jnp.bfloat16), wqkv_ref[0],
                  preferred_element_type=jnp.float32) + bqkv_ref[0]
    qkv = qkv.astype(jnp.bfloat16).reshape(nb, S, QKV_PAD)   # leading-dim split only

    # Attention batched over all nb examples with single-batch-dim 3-D einsums.
    # TODO(synk): fold the head loop into one 'bqhd,bkhd->bhqk' einsum once
    # multi-batch-dim dot_general lowering is verified on the target Mosaic.
    heads = []
    for hh in range(NH):
        q_h = qkv[:, :, hh * DH:(hh + 1) * DH]
        k_h = qkv[:, :, H + hh * DH:H + (hh + 1) * DH]
        v_h = qkv[:, :, 2 * H + hh * DH:2 * H + (hh + 1) * DH]
        s = jnp.einsum('bqd,bkd->bqk', q_h, k_h,
                       preferred_element_type=jnp.float32)
        s = s * scale + bias
        s = s - jnp.max(s, axis=-1, keepdims=True)
        p = jnp.exp(s)
        p = p * pl.reciprocal(jnp.sum(p, axis=-1, keepdims=True), approx=True)
        heads.append(jnp.einsum('bqk,bkd->bqd', p.astype(jnp.bfloat16), v_h,
                                preferred_element_type=jnp.float32))
    ctx = jnp.concatenate(heads, axis=-1).reshape(nb * S, H)

    # Single output projection across all heads / examples.
    attn = jnp.dot(ctx.astype(jnp.bfloat16), wo_ref[0],
                   preferred_element_type=jnp.float32) + bo_ref[0]
    h1 = _layer_norm(h + attn, ln1g_ref[0], ln1b_ref[0])

    ff = jnp.dot(h1.astype(jnp.bfloat16), w1_ref[0],
                 preferred_element_type=jnp.float32) + b1_ref[0]
    # TODO(synk): HF RoBERTa uses exact (erf) GELU; tanh kept for lowering safety.
    ff = jax.nn.gelu(ff, approximate=True)
    ff = jnp.dot(ff.astype(jnp.bfloat16), w2_ref[0],
                 preferred_element_type=jnp.float32) + b2_ref[0]
    h2 = _layer_norm(h1 + ff, ln2g_ref[0], ln2b_ref[0])

    h_ref[...] = h2

    @pl.when(l == pl.num_programs(1) - 1)
    def _():
        o_ref[...] = h2


def _heads_kernel(hm_ref, cls_ref, dw_ref, db_ref, lng_ref, lnb_ref,
                  emb_ref, decb_ref, sw_ref, sb_ref,
                  logits_ref, urc_ref, h_ref):
    """Vocab-tiled MLM head + URC score head.

    grid = (V // TV,) "arbitrary".  The dense->gelu->LN transform and the URC CLS
    score are computed once (vocab tile 0) into VMEM scratch and reused; each step
    contracts the transformed hidden state against one [TV, H] tile of the tied
    word embedding (no [H, V] transpose materialized in HBM).
    """
    v_idx = pl.program_id(0)

    @pl.when(v_idx == 0)
    def _():
        h = jnp.dot(hm_ref[...].astype(jnp.bfloat16), dw_ref[...],
                    preferred_element_type=jnp.float32) + db_ref[...]
        # TODO(synk): exact (erf) GELU in HF; tanh approximation for lowering safety.
        h = jax.nn.gelu(h, approximate=True)
        h_ref[...] = _layer_norm(h, lng_ref[...], lnb_ref[...])
        # URC score head on CLS tokens only: [B, H] @ [H, 3]
        urc_ref[...] = jnp.dot(cls_ref[...].astype(jnp.bfloat16), sw_ref[...],
                               preferred_element_type=jnp.float32) + sb_ref[...]

    # Tied decoder: contract against word_emb[v_tile] directly ([R,H] x [TV,H]^T).
    logits_ref[...] = lax.dot_general(
        h_ref[...].astype(jnp.bfloat16), emb_ref[...],
        (((1,), (1,)), ((), ())),
        preferred_element_type=jnp.float32) + decb_ref[...]


# ----------------------------- wrappers -----------------------------

def prepare_fused_params(params):
    """One-time parameter packing (hoisted out of the forward pass):
    stack per-layer weights along a leading layer axis, fuse+pad Q|K|V, and cast
    matmul weights to bf16 (biases / LayerNorm params stay f32)."""
    bf16 = jnp.bfloat16

    def stack(key, dtype=None):
        w = jnp.stack([lp[key] for lp in params["layers"]])
        return w.astype(dtype) if dtype is not None else w

    wqkv = jnp.concatenate([stack("wq"), stack("wk"), stack("wv")], axis=-1)  # [L,H,3H]
    bqkv = jnp.concatenate([stack("bq"), stack("bk"), stack("bv")], axis=-1)  # [L,1,3H]
    pad = QKV_PAD - 3 * H
    wqkv = jnp.pad(wqkv, ((0, 0), (0, 0), (0, pad))).astype(bf16)
    bqkv = jnp.pad(bqkv, ((0, 0), (0, 0), (0, pad)))
    return {
        "wqkv": wqkv, "bqkv": bqkv,
        "wo": stack("wo", bf16), "bo": stack("bo"),
        "ln1_g": stack("ln1_g"), "ln1_b": stack("ln1_b"),
        "w1": stack("w1", bf16), "b1": stack("b1"),
        "w2": stack("w2", bf16), "b2": stack("b2"),
        "ln2_g": stack("ln2_g"), "ln2_b": stack("ln2_b"),
        # MLM / URC head parameters
        "mlm_dense_w": params["mlm_dense_w"].astype(bf16),
        "mlm_dense_b": params["mlm_dense_b"],
        "mlm_ln_g": params["mlm_ln_g"], "mlm_ln_b": params["mlm_ln_b"],
        # tied decoder: use the [V, H] word embedding directly (no transpose copy)
        "dec_emb": params["word_emb"].astype(bf16),
        "mlm_dec_b": params["mlm_dec_b"],
        "W_w": params["W_w"].astype(bf16), "W_b": params["W_b"],
    }


def _num_branch_steps(total_examples):
    """v7x (2 TensorCores/chip): split the corrupt/URC halves across cores.
    v5e/v6e (1 TC): one big block -> fewer grid steps, fuller MXU."""
    try:
        kind = jax.devices()[0].device_kind.lower()
    except Exception:  # pragma: no cover
        kind = ""
    if "v7" in kind and total_examples % 2 == 0:
        return 2
    return 1


def fused_encoder(params, fused, tokens_all, attn_all, branch_steps):
    """Last hidden state [TB*S, H] for the fused (corrupt ++ urc) batch."""
    TB, Sc = tokens_all.shape
    assert Sc == S and TB % branch_steps == 0
    nb = TB // branch_steps

    # glue: embedding gather + learned positions (synthetic config).
    # TODO(synk): padding-offset position ids / token_type embeddings omitted.
    emb = params["word_emb"][tokens_all] + params["pos_emb"][None, :Sc, :]
    x2d = emb.reshape(TB * Sc, H)
    mask3 = attn_all.astype(jnp.float32).reshape(TB, 1, Sc)

    def inv2(shape):   # grid-invariant 2-D parameter
        return pl.BlockSpec(shape, lambda g, l: (0, 0))

    def lw(shape):     # per-layer streamed weight: leading layer axis indexed by l
        return pl.BlockSpec((1,) + shape, lambda g, l: (l, 0, 0))

    return pl.pallas_call(
        _encoder_layer_kernel,
        out_shape=jax.ShapeDtypeStruct((TB * Sc, H), jnp.float32),
        grid=(branch_steps, NUM_LAYERS),
        in_specs=[
            pl.BlockSpec((nb * S, H), lambda g, l: (g, 0)),     # embeddings (flat rows)
            pl.BlockSpec((nb, 1, S), lambda g, l: (g, 0, 0)),   # attention mask
            inv2((1, H)), inv2((1, H)),                          # emb LN g, b
            lw((H, QKV_PAD)), lw((1, QKV_PAD)),                  # Wqkv, bqkv
            lw((H, H)), lw((1, H)),                              # Wo, bo
            lw((1, H)), lw((1, H)),                              # ln1 g, b
            lw((H, F)), lw((1, F)),                              # W1, b1
            lw((F, H)), lw((1, H)),                              # W2, b2
            lw((1, H)), lw((1, H)),                              # ln2 g, b
        ],
        out_specs=pl.BlockSpec((nb * S, H), lambda g, l: (g, 0)),
        scratch_shapes=[pltpu.VMEM((nb * S, H), jnp.float32)],
        compiler_params=pltpu.CompilerParams(
            dimension_semantics=("parallel", "arbitrary"),
            vmem_limit_bytes=VMEM_LIMIT),
    )(x2d, mask3,
      params["emb_ln_g"], params["emb_ln_b"],
      fused["wqkv"], fused["bqkv"], fused["wo"], fused["bo"],
      fused["ln1_g"], fused["ln1_b"], fused["w1"], fused["b1"],
      fused["w2"], fused["b2"], fused["ln2_g"], fused["ln2_b"])


def mlm_and_score_heads(fused, hm2d, cls):
    """MLM logits on the corrupt-branch rows + URC score on the URC CLS tokens."""
    assert V % TV == 0
    rows = hm2d.shape[0]
    nb_cls = cls.shape[0]
    return pl.pallas_call(
        _heads_kernel,
        out_shape=(jax.ShapeDtypeStruct((rows, V), jnp.float32),
                   jax.ShapeDtypeStruct((nb_cls, 3), jnp.float32)),
        grid=(V // TV,),
        in_specs=[
            pl.BlockSpec((rows, H), lambda v: (0, 0)),       # corrupt-branch hidden
            pl.BlockSpec((nb_cls, H), lambda v: (0, 0)),     # URC CLS hidden
            pl.BlockSpec((H, H), lambda v: (0, 0)),          # mlm dense W
            pl.BlockSpec((1, H), lambda v: (0, 0)),          # mlm dense b
            pl.BlockSpec((1, H), lambda v: (0, 0)),          # mlm LN g
            pl.BlockSpec((1, H), lambda v: (0, 0)),          # mlm LN b
            pl.BlockSpec((TV, H), lambda v: (v, 0)),         # tied embedding tile [TV,H]
            pl.BlockSpec((1, TV), lambda v: (0, v)),         # decoder bias tile
            pl.BlockSpec((H, 3), lambda v: (0, 0)),          # score W
            pl.BlockSpec((1, 3), lambda v: (0, 0)),          # score b
        ],
        out_specs=(pl.BlockSpec((rows, TV), lambda v: (0, v)),
                   pl.BlockSpec((nb_cls, 3), lambda v: (0, 0))),
        scratch_shapes=[pltpu.VMEM((rows, H), jnp.float32)],
        # "arbitrary": vocab tile 0 seeds the shared scratch hidden state; megacore
        # parallelism would instead come from splitting the row dim at real scale.
        compiler_params=pltpu.CompilerParams(
            dimension_semantics=("arbitrary",),
            vmem_limit_bytes=VMEM_LIMIT),
    )(hm2d, cls,
      fused["mlm_dense_w"], fused["mlm_dense_b"],
      fused["mlm_ln_g"], fused["mlm_ln_b"],
      fused["dec_emb"], fused["mlm_dec_b"],
      fused["W_w"], fused["W_b"])


def post_model_forward(params, fused, batch_corrupt_tokens, batch_corrupt_mask_positions,
                       batch_urc_inputs, batch_mlm_attentions, batch_urc_attentions):
    # 1) One encoder pass over the fused [2B, S] batch (corrupt ++ urc).
    tokens_all = jnp.concatenate([batch_corrupt_tokens, batch_urc_inputs], axis=0)
    attn_all = jnp.concatenate([batch_mlm_attentions, batch_urc_attentions], axis=0)
    branch_steps = _num_branch_steps(tokens_all.shape[0])
    hidden2d = fused_encoder(params, fused, tokens_all, attn_all, branch_steps)  # [2B*S, H]

    # 2) One head kernel: MLM logits on corrupt half, score on URC CLS tokens.
    nb_c = batch_corrupt_tokens.shape[0]
    hm2d = hidden2d[:nb_c * S]                                        # [B*S, H]
    cls = hidden2d.reshape(tokens_all.shape[0], S, H)[nb_c:, 0, :]    # [B, H]
    logits2d, urc_cls_outputs = mlm_and_score_heads(fused, hm2d, cls)
    corrupt_outputs = logits2d.reshape(nb_c, S, V)

    # 3) Ragged gather of masked positions (Python-level, as in the torch code).
    corrupt_mask_outputs = []
    for i_batch, positions in enumerate(batch_corrupt_mask_positions):
        if len(positions) > 0:
            idx = jnp.asarray(positions, dtype=jnp.int32)
            corrupt_mask_outputs.append(corrupt_outputs[i_batch, idx, :])
        else:
            corrupt_mask_outputs.append(jnp.zeros((1, V), jnp.float32))

    return corrupt_mask_outputs, urc_cls_outputs


# ----------------------------- parameter init -----------------------------

def init_params(key):
    keys = iter(jax.random.split(key, 64))

    def nrm(shape, scale=0.02):
        return (scale * jax.random.normal(next(keys), shape)).astype(jnp.float32)

    word_emb = nrm((V, H))
    params = {
        "word_emb": word_emb,
        "pos_emb": nrm((S, H)),
        "emb_ln_g": jnp.ones((1, H), jnp.float32),
        "emb_ln_b": jnp.zeros((1, H), jnp.float32),
        "layers": [],
        "mlm_dense_w": nrm((H, H)),
        "mlm_dense_b": jnp.zeros((1, H), jnp.float32),
        "mlm_ln_g": jnp.ones((1, H), jnp.float32),
        "mlm_ln_b": jnp.zeros((1, H), jnp.float32),
        # decoder is tied to word_emb (used as [V, H] directly in the kernel)
        "mlm_dec_b": jnp.zeros((1, V), jnp.float32),
        "W_w": nrm((H, 3)),                            # self.W = nn.Linear(H, 3)
        "W_b": jnp.zeros((1, 3), jnp.float32),
    }
    for _ in range(NUM_LAYERS):
        params["layers"].append({
            "wq": nrm((H, H)), "bq": jnp.zeros((1, H), jnp.float32),
            "wk": nrm((H, H)), "bk": jnp.zeros((1, H), jnp.float32),
            "wv": nrm((H, H)), "bv": jnp.zeros((1, H), jnp.float32),
            "wo": nrm((H, H)), "bo": jnp.zeros((1, H), jnp.float32),
            "ln1_g": jnp.ones((1, H), jnp.float32),
            "ln1_b": jnp.zeros((1, H), jnp.float32),
            "w1": nrm((H, F)), "b1": jnp.zeros((1, F), jnp.float32),
            "w2": nrm((F, H)), "b2": jnp.zeros((1, H), jnp.float32),
            "ln2_g": jnp.ones((1, H), jnp.float32),
            "ln2_b": jnp.zeros((1, H), jnp.float32),
        })
    return params


# ----------------------------- main -----------------------------

if __name__ == "__main__":
    key = jax.random.PRNGKey(0)
    pkey, k1, k2 = jax.random.split(key, 3)
    params = init_params(pkey)
    fused = prepare_fused_params(params)   # hoisted: packed once at load time

    batch_corrupt_tokens = jax.random.randint(k1, (B, S), 0, V, dtype=jnp.int32)
    batch_urc_inputs = jax.random.randint(k2, (B, S), 0, V, dtype=jnp.int32)
    batch_mlm_attentions = jnp.ones((B, S), jnp.int32).at[0, S - 2:].set(0)
    batch_urc_attentions = jnp.ones((B, S), jnp.int32).at[1, S - 1:].set(0)
    # Ragged per-example masked positions (second example empty -> zeros(1, V) branch).
    batch_corrupt_mask_positions = [[1, 3], []]

    corrupt_mask_outputs, urc_cls_outputs = post_model_forward(
        params, fused, batch_corrupt_tokens, batch_corrupt_mask_positions,
        batch_urc_inputs, batch_mlm_attentions, batch_urc_attentions)

    jax.block_until_ready(urc_cls_outputs)
    for t in corrupt_mask_outputs:
        jax.block_until_ready(t)

    assert corrupt_mask_outputs[0].shape == (2, V)
    assert corrupt_mask_outputs[1].shape == (1, V)
    assert urc_cls_outputs.shape == (B, 3)
    print("KERNEL_OK")
</pallas_src>

<mosaic_0001>
module attributes {stable_mosaic.version = 11 : i64} {
  func.func @_encoder_layer_kernel(%arg0: i32, %arg1: i32, %arg2: memref<32x32xf32, #tpu.memory_space<vmem>>, %arg3: memref<4x1x8xf32, #tpu.memory_space<vmem>>, %arg4: memref<1x32xf32, #tpu.memory_space<vmem>>, %arg5: memref<1x32xf32, #tpu.memory_space<vmem>>, %arg6: memref<1x32x128xbf16, #tpu.memory_space<vmem>>, %arg7: memref<1x1x128xf32, #tpu.memory_space<vmem>>, %arg8: memref<1x32x32xbf16, #tpu.memory_space<vmem>>, %arg9: memref<1x1x32xf32, #tpu.memory_space<vmem>>, %arg10: memref<1x1x32xf32, #tpu.memory_space<vmem>>, %arg11: memref<1x1x32xf32, #tpu.memory_space<vmem>>, %arg12: memref<1x32x64xbf16, #tpu.memory_space<vmem>>, %arg13: memref<1x1x64xf32, #tpu.memory_space<vmem>>, %arg14: memref<1x64x32xbf16, #tpu.memory_space<vmem>>, %arg15: memref<1x1x32xf32, #tpu.memory_space<vmem>>, %arg16: memref<1x1x32xf32, #tpu.memory_space<vmem>>, %arg17: memref<1x1x32xf32, #tpu.memory_space<vmem>>, %arg18: memref<32x32xf32, #tpu.memory_space<vmem>>, %arg19: memref<32x32xf32, #tpu.memory_space<vmem>>) attributes {dimension_semantics = [#tpu.dimension_semantics<parallel>, #tpu.dimension_semantics<arbitrary>], iteration_bounds = array<i64: 1, 2>, scalar_prefetch = 0 : i64, scratch_operands = 1 : i64, tpu.core_type = #tpu.core_type<tc>, window_params = [{transform_indices = @transform_0, window_bounds = array<i64: 32, 32>}, {transform_indices = @transform_1, window_bounds = array<i64: 4, 1, 8>}, {pipeline_mode = #tpu.pipeline_mode<synchronous>, transform_indices = @transform_2, window_bounds = array<i64: 1, 32>}, {pipeline_mode = #tpu.pipeline_mode<synchronous>, transform_indices = @transform_3, window_bounds = array<i64: 1, 32>}, {transform_indices = @transform_4, window_bounds = array<i64: 1, 32, 128>}, {transform_indices = @transform_5, window_bounds = array<i64: 1, 1, 128>}, {transform_indices = @transform_6, window_bounds = array<i64: 1, 32, 32>}, {transform_indices = @transform_7, window_bounds = array<i64: 1, 1, 32>}, {transform_indices = @transform_8, window_bounds = array<i64: 1, 1, 32>}, {transform_indices = @transform_9, window_bounds = array<i64: 1, 1, 32>}, {transform_indices = @transform_10, window_bounds = array<i64: 1, 32, 64>}, {transform_indices = @transform_11, window_bounds = array<i64: 1, 1, 64>}, {transform_indices = @transform_12, window_bounds = array<i64: 1, 64, 32>}, {transform_indices = @transform_13, window_bounds = array<i64: 1, 1, 32>}, {transform_indices = @transform_14, window_bounds = array<i64: 1, 1, 32>}, {transform_indices = @transform_15, window_bounds = array<i64: 1, 1, 32>}, {transform_indices = @transform_16, window_bounds = array<i64: 32, 32>}]} {
    %c0_i32 = arith.constant 0 : i32
    %0 = arith.cmpi eq, %arg1, %c0_i32 : i32
    %1 = arith.extui %0 : i1 to i32
    %c0_i32_0 = arith.constant 0 : i32
    %2 = arith.cmpi ne, %1, %c0_i32_0 : i32
    scf.if %2 {
      %c0_73 = arith.constant 0 : index
      %c0_74 = arith.constant 0 : index
      %156 = vector.load %arg2[%c0_73, %c0_74] : memref<32x32xf32, #tpu.memory_space<vmem>>, vector<32x32xf32>
      %c0_75 = arith.constant 0 : index
      %c0_76 = arith.constant 0 : index
      %157 = vector.load %arg4[%c0_75, %c0_76] : memref<1x32xf32, #tpu.memory_space<vmem>>, vector<1x32xf32>
      %c0_77 = arith.constant 0 : index
      %c0_78 = arith.constant 0 : index
      %158 = vector.load %arg5[%c0_77, %c0_78] : memref<1x32xf32, #tpu.memory_space<vmem>>, vector<1x32xf32>
      %cst_79 = arith.constant dense<0.000000e+00> : vector<32xf32>
      %159 = vector.multi_reduction <add>, %156, %cst_79 [1] : vector<32x32xf32> to vector<32xf32>
      %160 = vector.shape_cast %159 : vector<32xf32> to vector<32x1xf32>
      %cst_80 = arith.constant 3.200000e+01 : f32
      %161 = vector.broadcast %cst_80 : f32 to vector<32x1xf32>
      %162 = arith.divf %160, %161 : vector<32x1xf32>
      %163 = vector.broadcast %162 : vector<32x1xf32> to vector<32x32xf32>
      %164 = arith.subf %156, %163 : vector<32x32xf32>
      %165 = arith.mulf %164, %164 : vector<32x32xf32>
      %cst_81 = arith.constant dense<0.000000e+00> : vector<32xf32>
      %166 = vector.multi_reduction <add>, %165, %cst_81 [1] : vector<32x32xf32> to vector<32xf32>
      %167 = vector.shape_cast %166 : vector<32xf32> to vector<32x1xf32>
      %cst_82 = arith.constant 3.200000e+01 : f32
      %168 = vector.broadcast %cst_82 : f32 to vector<32x1xf32>
      %169 = arith.divf %167, %168 : vector<32x1xf32>
      %170 = vector.broadcast %162 : vector<32x1xf32> to vector<32x32xf32>
      %171 = arith.subf %156, %170 : vector<32x32xf32>
      %cst_83 = arith.constant 9.99999974E-6 : f32
      %172 = vector.broadcast %cst_83 : f32 to vector<32x1xf32>
      %173 = arith.addf %169, %172 : vector<32x1xf32>
      %174 = math.rsqrt %173 : vector<32x1xf32>
      %175 = vector.broadcast %174 : vector<32x1xf32> to vector<32x32xf32>
      %176 = arith.mulf %171, %175 : vector<32x32xf32>
      %177 = vector.broadcast %157 : vector<1x32xf32> to vector<32x32xf32>
      %178 = arith.mulf %176, %177 : vector<32x32xf32>
      %179 = vector.broadcast %158 : vector<1x32xf32> to vector<32x32xf32>
      %180 = arith.addf %178, %179 : vector<32x32xf32>
      %c0_84 = arith.constant 0 : index
      %c0_85 = arith.constant 0 : index
      %181 = vector.load %arg19[%c0_84, %c0_85] : memref<32x32xf32, #tpu.memory_space<vmem>>, vector<32x32xf32>
      tpu.vector_store %arg19[%c0_84, %c0_85], %180 {strides = array<i32>} : memref<32x32xf32, #tpu.memory_space<vmem>>, vector<32x32xf32>,
    } else {
    }
    %c0 = arith.constant 0 : index
    %c0_1 = arith.constant 0 : index
    %3 = vector.load %arg19[%c0, %c0_1] : memref<32x32xf32, #tpu.memory_space<vmem>>, vector<32x32xf32>
    %c0_2 = arith.constant 0 : index
    %c0_3 = arith.constant 0 : index
    %c0_4 = arith.constant 0 : index
    %4 = vector.load %arg3[%c0_2, %c0_3, %c0_4] : memref<4x1x8xf32, #tpu.memory_space<vmem>>, vector<4x1x8xf32>
    %cst = arith.constant 1.000000e+00 : f32
    %5 = vector.broadcast %cst : f32 to vector<4x1x8xf32>
    %6 = arith.subf %4, %5 : vector<4x1x8xf32>
    %cst_5 = arith.constant 1.000000e+09 : f32
    %7 = vector.broadcast %cst_5 : f32 to vector<4x1x8xf32>
    %8 = arith.mulf %6, %7 : vector<4x1x8xf32>
    %9 = arith.truncf %3 : vector<32x32xf32> to vector<32x32xbf16>
    %c0_6 = arith.constant 0 : index
    %c0_7 = arith.constant 0 : index
    %c0_8 = arith.constant 0 : index
    %10 = vector.load %arg6[%c0_6, %c0_7, %c0_8] : memref<1x32x128xbf16, #tpu.memory_space<vmem>>, vector<1x32x128xbf16>
    %11 = vector.shape_cast %10 : vector<1x32x128xbf16> to vector<32x128xbf16>
    %cst_9 = arith.constant dense<0.000000e+00> : vector<32x128xf32>
    %12 = tpu.matmul %9, %11, %cst_9 {dimension_numbers = #tpu.dot_dimension_numbers<[1], [0], [0], [1], [0, 0, 1, 1], [], []>} : vector<32x32xbf16>, vector<32x128xbf16>, vector<32x128xf32> -> vector<32x128xf32>
    %c0_10 = arith.constant 0 : index
    %c0_11 = arith.constant 0 : index
    %c0_12 = arith.constant 0 : index
    %13 = vector.load %arg7[%c0_10, %c0_11, %c0_12] : memref<1x1x128xf32, #tpu.memory_space<vmem>>, vector<1x1x128xf32>
    %14 = vector.shape_cast %13 : vector<1x1x128xf32> to vector<1x128xf32>
    %15 = vector.broadcast %14 : vector<1x128xf32> to vector<32x128xf32>
    %16 = arith.addf %12, %15 : vector<32x128xf32>
    %17 = arith.truncf %16 : vector<32x128xf32> to vector<32x128xbf16>
    %18 = vector.shape_cast %17 : vector<32x128xbf16> to vector<4x8x128xbf16>
    %19 = vector.extract_strided_slice %18 {offsets = [0, 0, 0], sizes = [4, 8, 16], strides = [1, 1, 1]} : vector<4x8x128xbf16> to vector<4x8x16xbf16>
    %20 = vector.extract_strided_slice %18 {offsets = [0, 0, 32], sizes = [4, 8, 16], strides = [1, 1, 1]} : vector<4x8x128xbf16> to vector<4x8x16xbf16>
    %21 = vector.extract_strided_slice %18 {offsets = [0, 0, 64], sizes = [4, 8, 16], strides = [1, 1, 1]} : vector<4x8x128xbf16> to vector<4x8x16xbf16>
    "tpu.trace_start"() <{level = 10 : i32, message = "bqd,bkd->bqk"}> : () -> ()
    %cst_13 = arith.constant dense<0.000000e+00> : vector<4x8x8xf32>
    %22 = tpu.matmul %19, %20, %cst_13 {dimension_numbers = #tpu.dot_dimension_numbers<[2], [2], [1], [1], [0, 0, 0, 1, 1, 1], [0], [0]>} : vector<4x8x16xbf16>, vector<4x8x16xbf16>, vector<4x8x8xf32> -> vector<4x8x8xf32>
    "tpu.trace_stop"() : () -> ()
    %cst_14 = arith.constant 2.500000e-01 : f32
    %23 = vector.broadcast %cst_14 : f32 to vector<4x8x8xf32>
    %24 = arith.mulf %22, %23 : vector<4x8x8xf32>
    %25 = vector.broadcast %8 : vector<4x1x8xf32> to vector<4x8x8xf32>
    %26 = arith.addf %24, %25 : vector<4x8x8xf32>
    %cst_15 = arith.constant dense<0xFF800000> : vector<4x8xf32>
    %27 = vector.multi_reduction <maximumf>, %26, %cst_15 [2] : vector<4x8x8xf32> to vector<4x8xf32>
    %28 = vector.shape_cast %27 : vector<4x8xf32> to vector<4x8x1xf32>
    %29 = vector.broadcast %28 : vector<4x8x1xf32> to vector<4x8x8xf32>
    %30 = arith.subf %26, %29 : vector<4x8x8xf32>
    %31 = math.exp %30 : vector<4x8x8xf32>
    %cst_16 = arith.constant dense<0.000000e+00> : vector<4x8xf32>
    %32 = vector.multi_reduction <add>, %31, %cst_16 [2] : vector<4x8x8xf32> to vector<4x8xf32>
    %33 = vector.shape_cast %32 : vector<4x8xf32> to vector<4x8x1xf32>
    %34 = tpu.reciprocal %33 {approx = true} : vector<4x8x1xf32> -> vector<4x8x1xf32>
    %35 = vector.broadcast %34 : vector<4x8x1xf32> to vector<4x8x8xf32>
    %36 = arith.mulf %31, %35 : vector<4x8x8xf32>
    %37 = arith.truncf %36 : vector<4x8x8xf32> to vector<4x8x8xbf16>
    "tpu.trace_start"() <{level = 10 : i32, message = "bqk,bkd->bqd"}> : () -> ()
    %cst_17 = arith.constant dense<0.000000e+00> : vector<4x8x16xf32>
    %38 = tpu.matmul %37, %21, %cst_17 {dimension_numbers = #tpu.dot_dimension_numbers<[2], [1], [1], [2], [0, 0, 0, 1, 1, 2], [0], [0]>} : vector<4x8x8xbf16>, vector<4x8x16xbf16>, vector<4x8x16xf32> -> vector<4x8x16xf32>
    "tpu.trace_stop"() : () -> ()
    %39 = vector.extract_strided_slice %18 {offsets = [0, 0, 16], sizes = [4, 8, 16], strides = [1, 1, 1]} : vector<4x8x128xbf16> to vector<4x8x16xbf16>
    %40 = vector.extract_strided_slice %18 {offsets = [0, 0, 48], sizes = [4, 8, 16], strides = [1, 1, 1]} : vector<4x8x128xbf16> to vector<4x8x16xbf16>
    %41 = vector.extract_strided_slice %18 {offsets = [0, 0, 80], sizes = [4, 8, 16], strides = [1, 1, 1]} : vector<4x8x128xbf16> to vector<4x8x16xbf16>
    "tpu.trace_start"() <{level = 10 : i32, message = "bqd,bkd->bqk"}> : () -> ()
    %cst_18 = arith.constant dense<0.000000e+00> : vector<4x8x8xf32>
    %42 = tpu.matmul %39, %40, %cst_18 {dimension_numbers = #tpu.dot_dimension_numbers<[2], [2], [1], [1], [0, 0, 0, 1, 1, 1], [0], [0]>} : vector<4x8x16xbf16>, vector<4x8x16xbf16>, vector<4x8x8xf32> -> vector<4x8x8xf32>
    "tpu.trace_stop"() : () -> ()
    %cst_19 = arith.constant 2.500000e-01 : f32
    %43 = vector.broadcast %cst_19 : f32 to vector<4x8x8xf32>
    %44 = arith.mulf %42, %43 : vector<4x8x8xf32>
    %45 = vector.broadcast %8 : vector<4x1x8xf32> to vector<4x8x8xf32>
    %46 = arith.addf %44, %45 : vector<4x8x8xf32>
    %cst_20 = arith.constant dense<0xFF800000> : vector<4x8xf32>
    %47 = vector.multi_reduction <maximumf>, %46, %cst_20 [2] : vector<4x8x8xf32> to vector<4x8xf32>
    %48 = vector.shape_cast %47 : vector<4x8xf32> to vector<4x8x1xf32>
    %49 = vector.broadcast %48 : vector<4x8x1xf32> to vector<4x8x8xf32>
    %50 = arith.subf %46, %49 : vector<4x8x8xf32>
    %51 = math.exp %50 : vector<4x8x8xf32>
    %cst_21 = arith.constant dense<0.000000e+00> : vector<4x8xf32>
    %52 = vector.multi_reduction <add>, %51, %cst_21 [2] : vector<4x8x8xf32> to vector<4x8xf32>
    %53 = vector.shape_cast %52 : vector<4x8xf32> to vector<4x8x1xf32>
    %54 = tpu.reciprocal %53 {approx = true} : vector<4x8x1xf32> -> vector<4x8x1xf32>
    %55 = vector.broadcast %54 : vector<4x8x1xf32> to vector<4x8x8xf32>
    %56 = arith.mulf %51, %55 : vector<4x8x8xf32>
    %57 = arith.truncf %56 : vector<4x8x8xf32> to vector<4x8x8xbf16>
    "tpu.trace_start"() <{level = 10 : i32, message = "bqk,bkd->bqd"}> : () -> ()
    %cst_22 = arith.constant dense<0.000000e+00> : vector<4x8x16xf32>
    %58 = tpu.matmul %57, %41, %cst_22 {dimension_numbers = #tpu.dot_dimension_numbers<[2], [1], [1], [2], [0, 0, 0, 1, 1, 2], [0], [0]>} : vector<4x8x8xbf16>, vector<4x8x16xbf16>, vector<4x8x16xf32> -> vector<4x8x16xf32>
    "tpu.trace_stop"() : () -> ()
    %59 = tpu.concatenate %38, %58 in 2 : vector<4x8x16xf32>, vector<4x8x16xf32> -> vector<4x8x32xf32>
    %60 = vector.shape_cast %59 : vector<4x8x32xf32> to vector<32x32xf32>
    %61 = arith.truncf %60 : vector<32x32xf32> to vector<32x32xbf16>
    %c0_23 = arith.constant 0 : index
    %c0_24 = arith.constant 0 : index
    %c0_25 = arith.constant 0 : index
    %62 = vector.load %arg8[%c0_23, %c0_24, %c0_25] : memref<1x32x32xbf16, #tpu.memory_space<vmem>>, vector<1x32x32xbf16>
    %63 = vector.shape_cast %62 : vector<1x32x32xbf16> to vector<32x32xbf16>
    %cst_26 = arith.constant dense<0.000000e+00> : vector<32x32xf32>
    %64 = tpu.matmul %61, %63, %cst_26 {dimension_numbers = #tpu.dot_dimension_numbers<[1], [0], [0], [1], [0, 0, 1, 1], [], []>} : vector<32x32xbf16>, vector<32x32xbf16>, vector<32x32xf32> -> vector<32x32xf32>
    %c0_27 = arith.constant 0 : index
    %c0_28 = arith.constant 0 : index
    %c0_29 = arith.constant 0 : index
    %65 = vector.load %arg9[%c0_27, %c0_28, %c0_29] : memref<1x1x32xf32, #tpu.memory_space<vmem>>, vector<1x1x32xf32>
    %66 = vector.shape_cast %65 : vector<1x1x32xf32> to vector<1x32xf32>
    %67 = vector.broadcast %66 : vector<1x32xf32> to vector<32x32xf32>
    %68 = arith.addf %64, %67 : vector<32x32xf32>
    %69 = arith.addf %3, %68 : vector<32x32xf32>
    %c0_30 = arith.constant 0 : index
    %c0_31 = arith.constant 0 : index
    %c0_32 = arith.constant 0 : index
    %70 = vector.load %arg10[%c0_30, %c0_31, %c0_32] : memref<1x1x32xf32, #tpu.memory_space<vmem>>, vector<1x1x32xf32>
    %71 = vector.shape_cast %70 : vector<1x1x32xf32> to vector<1x32xf32>
    %c0_33 = arith.constant 0 : index
    %c0_34 = arith.constant 0 : index
    %c0_35 = arith.constant 0 : index
    %72 = vector.load %arg11[%c0_33, %c0_34, %c0_35] : memref<1x1x32xf32, #tpu.memory_space<vmem>>, vector<1x1x32xf32>
    %73 = vector.shape_cast %72 : vector<1x1x32xf32> to vector<1x32xf32>
    %cst_36 = arith.constant dense<0.000000e+00> : vector<32xf32>
    %74 = vector.multi_reduction <add>, %69, %cst_36 [1] : vector<32x32xf32> to vector<32xf32>
    %75 = vector.shape_cast %74 : vector<32xf32> to vector<32x1xf32>
    %cst_37 = arith.constant 3.200000e+01 : f32
    %76 = vector.broadcast %cst_37 : f32 to vector<32x1xf32>
    %77 = arith.divf %75, %76 : vector<32x1xf32>
    %78 = vector.broadcast %77 : vector<32x1xf32> to vector<32x32xf32>
    %79 = arith.subf %69, %78 : vector<32x32xf32>
    %80 = arith.mulf %79, %79 : vector<32x32xf32>
    %cst_38 = arith.constant dense<0.000000e+00> : vector<32xf32>
    %81 = vector.multi_reduction <add>, %80, %cst_38 [1] : vector<32x32xf32> to vector<32xf32>
    %82 = vector.shape_cast %81 : vector<32xf32> to vector<32x1xf32>
    %cst_39 = arith.constant 3.200000e+01 : f32
    %83 = vector.broadcast %cst_39 : f32 to vector<32x1xf32>
    %84 = arith.divf %82, %83 : vector<32x1xf32>
    %85 = vector.broadcast %77 : vector<32x1xf32> to vector<32x32xf32>
    %86 = arith.subf %69, %85 : vector<32x32xf32>
    %cst_40 = arith.constant 9.99999974E-6 : f32
    %87 = vector.broadcast %cst_40 : f32 to vector<32x1xf32>
    %88 = arith.addf %84, %87 : vector<32x1xf32>
    %89 = math.rsqrt %88 : vector<32x1xf32>
    %90 = vector.broadcast %89 : vector<32x1xf32> to vector<32x32xf32>
    %91 = arith.mulf %86, %90 : vector<32x32xf32>
    %92 = vector.broadcast %71 : vector<1x32xf32> to vector<32x32xf32>
    %93 = arith.mulf %91, %92 : vector<32x32xf32>
    %94 = vector.broadcast %73 : vector<1x32xf32> to vector<32x32xf32>
    %95 = arith.addf %93, %94 : vector<32x32xf32>
    %96 = arith.truncf %95 : vector<32x32xf32> to vector<32x32xbf16>
    %c0_41 = arith.constant 0 : index
    %c0_42 = arith.constant 0 : index
    %c0_43 = arith.constant 0 : index
    %97 = vector.load %arg12[%c0_41, %c0_42, %c0_43] : memref<1x32x64xbf16, #tpu.memory_space<vmem>>, vector<1x32x64xbf16>
    %98 = vector.shape_cast %97 : vector<1x32x64xbf16> to vector<32x64xbf16>
    %cst_44 = arith.constant dense<0.000000e+00> : vector<32x64xf32>
    %99 = tpu.matmul %96, %98, %cst_44 {dimension_numbers = #tpu.dot_dimension_numbers<[1], [0], [0], [1], [0, 0, 1, 1], [], []>} : vector<32x32xbf16>, vector<32x64xbf16>, vector<32x64xf32> -> vector<32x64xf32>
    %c0_45 = arith.constant 0 : index
    %c0_46 = arith.constant 0 : index
    %c0_47 = arith.constant 0 : index
    %100 = vector.load %arg13[%c0_45, %c0_46, %c0_47] : memref<1x1x64xf32, #tpu.memory_space<vmem>>, vector<1x1x64xf32>
    %101 = vector.shape_cast %100 : vector<1x1x64xf32> to vector<1x64xf32>
    %102 = vector.broadcast %101 : vector<1x64xf32> to vector<32x64xf32>
    %103 = arith.addf %99, %102 : vector<32x64xf32>
    %104 = arith.mulf %103, %103 : vector<32x64xf32>
    %105 = arith.mulf %103, %104 : vector<32x64xf32>
    %cst_48 = arith.constant 4.471500e-02 : f32
    %106 = vector.broadcast %cst_48 : f32 to vector<32x64xf32>
    %107 = arith.mulf %106, %105 : vector<32x64xf32>
    %108 = arith.addf %103, %107 : vector<32x64xf32>
    %cst_49 = arith.constant 0.797884583 : f32
    %109 = vector.broadcast %cst_49 : f32 to vector<32x64xf32>
    %110 = arith.mulf %109, %108 : vector<32x64xf32>
    %111 = math.tanh %110 : vector<32x64xf32>
    %cst_50 = arith.constant 1.000000e+00 : f32
    %112 = vector.broadcast %cst_50 : f32 to vector<32x64xf32>
    %113 = arith.addf %112, %111 : vector<32x64xf32>
    %cst_51 = arith.constant 5.000000e-01 : f32
    %114 = vector.broadcast %cst_51 : f32 to vector<32x64xf32>
    %115 = arith.mulf %114, %113 : vector<32x64xf32>
    %116 = arith.mulf %103, %115 : vector<32x64xf32>
    %117 = arith.truncf %116 : vector<32x64xf32> to vector<32x64xbf16>
    %c0_52 = arith.constant 0 : index
    %c0_53 = arith.constant 0 : index
    %c0_54 = arith.constant 0 : index
    %118 = vector.load %arg14[%c0_52, %c0_53, %c0_54] : memref<1x64x32xbf16, #tpu.memory_space<vmem>>, vector<1x64x32xbf16>
    %119 = vector.shape_cast %118 : vector<1x64x32xbf16> to vector<64x32xbf16>
    %cst_55 = arith.constant dense<0.000000e+00> : vector<32x32xf32>
    %120 = tpu.matmul %117, %119, %cst_55 {dimension_numbers = #tpu.dot_dimension_numbers<[1], [0], [0], [1], [0, 0, 1, 1], [], []>} : vector<32x64xbf16>, vector<64x32xbf16>, vector<32x32xf32> -> vector<32x32xf32>
    %c0_56 = arith.constant 0 : index
    %c0_57 = arith.constant 0 : index
    %c0_58 = arith.constant 0 : index
    %121 = vector.load %arg15[%c0_56, %c0_57, %c0_58] : memref<1x1x32xf32, #tpu.memory_space<vmem>>, vector<1x1x32xf32>
    %122 = vector.shape_cast %121 : vector<1x1x32xf32> to vector<1x32xf32>
    %123 = vector.broadcast %122 : vector<1x32xf32> to vector<32x32xf32>
    %124 = arith.addf %120, %123 : vector<32x32xf32>
    %125 = arith.addf %95, %124 : vector<32x32xf32>
    %c0_59 = arith.constant 0 : index
    %c0_60 = arith.constant 0 : index
    %c0_61 = arith.constant 0 : index
    %126 = vector.load %arg16[%c0_59, %c0_60, %c0_61] : memref<1x1x32xf32, #tpu.memory_space<vmem>>, vector<1x1x32xf32>
    %127 = vector.shape_cast %126 : vector<1x1x32xf32> to vector<1x32xf32>
    %c0_62 = arith.constant 0 : index
    %c0_63 = arith.constant 0 : index
    %c0_64 = arith.constant 0 : index
    %128 = vector.load %arg17[%c0_62, %c0_63, %c0_64] : memref<1x1x32xf32, #tpu.memory_space<vmem>>, vector<1x1x32xf32>
    %129 = vector.shape_cast %128 : vector<1x1x32xf32> to vector<1x32xf32>
    %cst_65 = arith.constant dense<0.000000e+00> : vector<32xf32>
    %130 = vector.multi_reduction <add>, %125, %cst_65 [1] : vector<32x32xf32> to vector<32xf32>
    %131 = vector.shape_cast %130 : vector<32xf32> to vector<32x1xf32>
    %cst_66 = arith.constant 3.200000e+01 : f32
    %132 = vector.broadcast %cst_66 : f32 to vector<32x1xf32>
    %133 = arith.divf %131, %132 : vector<32x1xf32>
    %134 = vector.broadcast %133 : vector<32x1xf32> to vector<32x32xf32>
    %135 = arith.subf %125, %134 : vector<32x32xf32>
    %136 = arith.mulf %135, %135 : vector<32x32xf32>
    %cst_67 = arith.constant dense<0.000000e+00> : vector<32xf32>
    %137 = vector.multi_reduction <add>, %136, %cst_67 [1] : vector<32x32xf32> to vector<32xf32>
    %138 = vector.shape_cast %137 : vector<32xf32> to vector<32x1xf32>
    %cst_68 = arith.constant 3.200000e+01 : f32
    %139 = vector.broadcast %cst_68 : f32 to vector<32x1xf32>
    %140 = arith.divf %138, %139 : vector<32x1xf32>
    %141 = vector.broadcast %133 : vector<32x1xf32> to vector<32x32xf32>
    %142 = arith.subf %125, %141 : vector<32x32xf32>
    %cst_69 = arith.constant 9.99999974E-6 : f32
    %143 = vector.broadcast %cst_69 : f32 to vector<32x1xf32>
    %144 = arith.addf %140, %143 : vector<32x1xf32>
    %145 = math.rsqrt %144 : vector<32x1xf32>
    %146 = vector.broadcast %145 : vector<32x1xf32> to vector<32x32xf32>
    %147 = arith.mulf %142, %146 : vector<32x32xf32>
    %148 = vector.broadcast %127 : vector<1x32xf32> to vector<32x32xf32>
    %149 = arith.mulf %147, %148 : vector<32x32xf32>
    %150 = vector.broadcast %129 : vector<1x32xf32> to vector<32x32xf32>
    %151 = arith.addf %149, %150 : vector<32x32xf32>
    %c0_70 = arith.constant 0 : index
    %c0_71 = arith.constant 0 : index
    %152 = vector.load %arg19[%c0_70, %c0_71] : memref<32x32xf32, #tpu.memory_space<vmem>>, vector<32x32xf32>
    tpu.vector_store %arg19[%c0_70, %c0_71], %151 {strides = array<i32>} : memref<32x32xf32, #tpu.memory_space<vmem>>, vector<32x32xf32>,
    %c1_i32 = arith.constant 1 : i32
    %153 = arith.cmpi eq, %arg1, %c1_i32 : i32
    %154 = arith.extui %153 : i1 to i32
    %c0_i32_72 = arith.constant 0 : i32
    %155 = arith.cmpi ne, %154, %c0_i32_72 : i32
    scf.if %155 {
      %c0_73 = arith.constant 0 : index
      %c0_74 = arith.constant 0 : index
      %156 = vector.load %arg18[%c0_73, %c0_74] : memref<32x32xf32, #tpu.memory_space<vmem>>, vector<32x32xf32>
      tpu.vector_store %arg18[%c0_73, %c0_74], %151 {strides = array<i32>} : memref<32x32xf32, #tpu.memory_space<vmem>>, vector<32x32xf32>,
    } else {
    }
    return
  }
  func.func @transform_0(%arg0: i32, %arg1: i32) -> (i32, i32) {
    %c0_i32 = arith.constant 0 : i32
    %c0_i32_0 = arith.constant 0 : i32
    return %arg0, %c0_i32 : i32, i32
  }
  func.func @transform_1(%arg0: i32, %arg1: i32) -> (i32, i32, i32) {
    %c0_i32 = arith.constant 0 : i32
    %c0_i32_0 = arith.constant 0 : i32
    %c0_i32_1 = arith.constant 0 : i32
    return %arg0, %c0_i32, %c0_i32_0 : i32, i32, i32
  }
  func.func @transform_2(%arg0: i32, %arg1: i32) -> (i32, i32) {
    %c0_i32 = arith.constant 0 : i32
    %c0_i32_0 = arith.constant 0 : i32
    %c0_i32_1 = arith.constant 0 : i32
    return %c0_i32, %c0_i32_0 : i32, i32
  }
  func.func @transform_3(%arg0: i32, %arg1: i32) -> (i32, i32) {
    %c0_i32 = arith.constant 0 : i32
    %c0_i32_0 = arith.constant 0 : i32
    %c0_i32_1 = arith.constant 0 : i32
    return %c0_i32, %c0_i32_0 : i32, i32
  }
  func.func @transform_4(%arg0: i32, %arg1: i32) -> (i32, i32, i32) {
    %c0_i32 = arith.constant 0 : i32
    %c0_i32_0 = arith.constant 0 : i32
    %c0_i32_1 = arith.constant 0 : i32
    return %arg1, %c0_i32, %c0_i32_0 : i32, i32, i32
  }
  func.func @transform_5(%arg0: i32, %arg1: i32) -> (i32, i32, i32) {
    %c0_i32 = arith.constant 0 : i32
    %c0_i32_0 = arith.constant 0 : i32
    %c0_i32_1 = arith.constant 0 : i32
    return %arg1, %c0_i32, %c0_i32_0 : i32, i32, i32
  }
  func.func @transform_6(%arg0: i32, %arg1: i32) -> (i32, i32, i32) {
    %c0_i32 = arith.constant 0 : i32
    %c0_i32_0 = arith.constant 0 : i32
    %c0_i32_1 = arith.constant 0 : i32
    return %arg1, %c0_i32, %c0_i32_0 : i32, i32, i32
  }
  func.func @transform_7(%arg0: i32, %arg1: i32) -> (i32, i32, i32) {
    %c0_i32 = arith.constant 0 : i32
    %c0_i32_0 = arith.constant 0 : i32
    %c0_i32_1 = arith.constant 0 : i32
    return %arg1, %c0_i32, %c0_i32_0 : i32, i32, i32
  }
  func.func @transform_8(%arg0: i32, %arg1: i32) -> (i32, i32, i32) {
    %c0_i32 = arith.constant 0 : i32
    %c0_i32_0 = arith.constant 0 : i32
    %c0_i32_1 = arith.constant 0 : i32
    return %arg1, %c0_i32, %c0_i32_0 : i32, i32, i32
  }
  func.func @transform_9(%arg0: i32, %arg1: i32) -> (i32, i32, i32) {
    %c0_i32 = arith.constant 0 : i32
    %c0_i32_0 = arith.constant 0 : i32
    %c0_i32_1 = arith.constant 0 : i32
    return %arg1, %c0_i32, %c0_i32_0 : i32, i32, i32
  }
  func.func @transform_10(%arg0: i32, %arg1: i32) -> (i32, i32, i32) {
    %c0_i32 = arith.constant 0 : i32
    %c0_i32_0 = arith.constant 0 : i32
    %c0_i32_1 = arith.constant 0 : i32
    return %arg1, %c0_i32, %c0_i32_0 : i32, i32, i32
  }
  func.func @transform_11(%arg0: i32, %arg1: i32) -> (i32, i32, i32) {
    %c0_i32 = arith.constant 0 : i32
    %c0_i32_0 = arith.constant 0 : i32
    %c0_i32_1 = arith.constant 0 : i32
    return %arg1, %c0_i32, %c0_i32_0 : i32, i32, i32
  }
  func.func @transform_12(%arg0: i32, %arg1: i32) -> (i32, i32, i32) {
    %c0_i32 = arith.constant 0 : i32
    %c0_i32_0 = arith.constant 0 : i32
    %c0_i32_1 = arith.constant 0 : i32
    return %arg1, %c0_i32, %c0_i32_0 : i32, i32, i32
  }
  func.func @transform_13(%arg0: i32, %arg1: i32) -> (i32, i32, i32) {
    %c0_i32 = arith.constant 0 : i32
    %c0_i32_0 = arith.constant 0 : i32
    %c0_i32_1 = arith.constant 0 : i32
    return %arg1, %c0_i32, %c0_i32_0 : i32, i32, i32
  }
  func.func @transform_14(%arg0: i32, %arg1: i32) -> (i32, i32, i32) {
    %c0_i32 = arith.constant 0 : i32
    %c0_i32_0 = arith.constant 0 : i32
    %c0_i32_1 = arith.constant 0 : i32
    return %arg1, %c0_i32, %c0_i32_0 : i32, i32, i32
  }
  func.func @transform_15(%arg0: i32, %arg1: i32) -> (i32, i32, i32) {
    %c0_i32 = arith.constant 0 : i32
    %c0_i32_0 = arith.constant 0 : i32
    %c0_i32_1 = arith.constant 0 : i32
    return %arg1, %c0_i32, %c0_i32_0 : i32, i32, i32
  }
  func.func @transform_16(%arg0: i32, %arg1: i32) -> (i32, i32) {
    %c0_i32 = arith.constant 0 : i32
    %c0_i32_0 = arith.constant 0 : i32
    return %arg0, %c0_i32 : i32, i32
  }
}

</mosaic_0001>

<bundles_post_ra>
// kernel: tpu_custom_call.1
= control target key start
LH: loop header
LB: loop body
LE: loop exit
PB: predicated region body
PF: predicated region fallthrough
CT: control target
= control target key end

     0   :  { %s3883_s0 = inlined_call_operand.vmem [shape: f32[32,32], index: 0, kind: input, shape index: {}]   ;;  %s3884_s1 = inlined_call_operand.hbm [shape: f32[4,1,8], index: 1, kind: input, shape index: {}]   ;;  %s3885_s2 = inlined_call_operand.vmem [shape: f32[1,32], index: 2, kind: input, shape index: {}]   ;;  %s3886_s3 = inlined_call_operand.hbm [shape: f32[1,32], index: 3, kind: input, shape index: {}]   ;;  %s3887_s4 = inlined_call_operand.vmem [shape: bf16[2,32,128], index: 4, kind: input, shape index: {}]   ;;  %s3888_s5 = inlined_call_operand.vmem [shape: f32[2,1,128], index: 5, kind: input, shape index: {}]   ;;  %s3889_s6 = inlined_call_operand.vmem [shape: bf16[2,32,32], index: 6, kind: input, shape index: {}]   ;;  %s3890_s7 = inlined_call_operand.vmem [shape: f32[2,1,32], index: 7, kind: input, shape index: {}]   ;;  %s3891_s8 = inlined_call_operand.vmem [shape: f32[2,1,32], index: 8, kind: input, shape index: {}]   ;;  %s3892_s9 = inlined_call_operand.vmem [shape: f32[2,1,32], index: 9, kind: input, shape index: {}]   ;;  %s3893_s10 = inlined_call_operand.hbm [shape: bf16[2,32,64], index: 10, kind: input, shape index: {}]   ;;  %s3894_s11 = inlined_call_operand.vmem [shape: f32[2,1,64], index: 11, kind: input, shape index: {}]   ;;  %s3895_s12 = inlined_call_operand.vmem [shape: bf16[2,64,32], index: 12, kind: input, shape index: {}]   ;;  %s3896_s13 = inlined_call_operand.vmem [shape: f32[2,1,32], index: 13, kind: input, shape index: {}]   ;;  %s3897_s14 = inlined_call_operand.vmem [shape: f32[2,1,32], index: 14, kind: input, shape index: {}]   ;;  %s3898_s15 = inlined_call_operand.vmem [shape: f32[2,1,32], index: 15, kind: input, shape index: {}]   ;;  %s3899_s16 = inlined_call_operand.hbm [shape: f32[32,32], index: 16, kind: output, shape index: {}]  }
   0x1   :  { %3909 = sst [smem:[#allocation18_spill]] %s3883_s0 }
   0x2   :  { %3910 = sst [smem:[#allocation19_spill]] %s3884_s1 }
   0x3   :  { %3911 = sst [smem:[#allocation20_spill]] %s3885_s2 }
   0x4   :  { %3912 = sst [smem:[#allocation21_spill]] %s3886_s3 }
   0x5   :  { %3913 = sst [smem:[#allocation22_spill]] %s3887_s4 }
   0x6   :  { %3914 = sst [smem:[#allocation23_spill]] %s3889_s6 }
   0x7   :  { %3915 = sst [smem:[#allocation24_spill]] %s3891_s8 }
   0x8   :  { %3916 = sst [smem:[#allocation25_spill]] %s3892_s9 }
   0x9   :  { %3917 = sst [smem:[#allocation26_spill]] %s3893_s10 }
   0xa   :  { %3918 = sst [smem:[#allocation27_spill]] %s3894_s11 }
   0xb   :  { %3919 = sst [smem:[#allocation28_spill]] %s3895_s12 }
   0xc   :  { %3920 = sst [smem:[#allocation29_spill]] %s3896_s13 }
   0xd   :  { %3921 = sst [smem:[#allocation30_spill]] %s3897_s14 }
   0xe   :  { %3922 = sst [smem:[#allocation31_spill]] %s3898_s15 }
   0xf   :  { %3923 = sst [smem:[#allocation32_spill]] %s3899_s16 }
  0x10   :  { %21 = vsyncpa [#allocation4], 0 }
  0x11   :  { %22 = vsyncpa [#allocation7], 0 }
  0x12   :  { %23 = vsyncpa [#allocation5], 0  ;;  %s3313_s21 = smov 0   ;;  %s3315_s22 = smov 0  }
  0x13   :  { %s3317_s23 = smov 0   ;;  %s3319_s24 = smov 0  }
  0x14   :  { %s3321_s25 = smov 0   ;;  %s3323_s26 = smov 0  }
  0x15 LB: > { %3924 = sst [smem:[#allocation14_spill]] %s3196_s23  ;;  %s3342_s27 = sadd.s32 4294967295, %s3208_s26   ;;  %s3208_s26 = sphi %s3323_s26, %s29_s26   ;;  %s3204_s25 = sphi %s3321_s25, %s3969_s25   ;;  %s3200_s24 = sphi %s3319_s24, %s3968_s24   ;;  %s3196_s23 = sphi %s3317_s23, %s3967_s23   ;;  %s3192_s22 = sphi %s3315_s22, %s3971_s22   ;;  %s3188_s21 = sphi %s3313_s21, %s3970_s21  }
  0x16   : > { %3925 = sst [smem:[#allocation15_spill]] %s3204_s25  ;;  %p305_p0 = scmp.ne.s32.totalorder %s3196_s23, %s3192_s22 }
  0x17   : > { %p306_p1 = scmp.eq.s32.totalorder %s3208_s26, 0  ;;  %p311_p2 = scmp.ne.s32.totalorder %s3192_s22, %s3188_s21 }
  0x18   : > { %p3902_p3 = scmp.eq.s32.totalorder %s3342_s27, 0  ;;  %p2587_p4 = scmp.ge.s32.totalorder %s3208_s26, 1 }
  0x19   : > { %p307_p5 = por %p306_p1, %p305_p0  ;;  %p478_p6 = scmp.lt.s32.totalorder %s3208_s26, 3 }
  0x1a   : > { %p3353_p7 = por %p3902_p3, %p311_p2  ;;  %s3210_s30 = smov [#allocation3]  }
  0x1b   : > { %p3357_p8 = pnand %p2587_p4, %p478_p6  ;;  %s502_s0 = sshll.u32 %s3210_s30, 4  ;;  %s503_s0 = int_to_ptr.vmem [resolvable:$true] %s502_s0 }
  0x1c   : > { %s3926_s28 = scalar_select %p3353_p7, 1, 0 }
  0x1d   : > { %s3927_s29 = scalar_select %p3357_p8, 1, 0 }
  0x1e   : > { %p2867_p9 = pneg %p3357_p8  ;;  %p2880_p11 = scmp.lt.s32.totalorder %s3208_s26, 2 }
  0x1f   : > { %s3930_s1 = sld [smem:[#allocation19_spill]] }
  0x20   : > { %p3365_p10 = pnand %p2867_p9, %p3902_p3  ;;  %p3370_p12 = pnand %p2880_p11, %p307_p5 }
  0x22   : > { %s3929_s18 = scalar_select %p3370_p12, 1, 0 }
  0x23   : > { %p3036_p0 = pneg %p3365_p10 }
  0x25   : > { %s3034_s21 = scalar_lea.hbm %s3930_s1, 64 }
  0x26   : > { %p3035_p13 = scmp.ne.s32.totalorder %s3930_s1, %s3034_s21  ;;  %p3041_p4 = scmp.lt.u32.totalorder %s3034_s21, %s3930_s1 }
  0x28   : > { %p3037_p1 = pnand %p3036_p0, %p3035_p13 }
  0x2a   : > { %p3038_p2 = pneg %p3037_p1 }
  0x2c   : > { %p3043_p5 = pnand %p3041_p4, %p3038_p2 }
  0x2e   : > { %3046 = shalt.err (!%p3043_p5)
}
  0x2f   : > { %s3047_s14 = scalar_lea.vmem %s503_s0, 64  ;;  %p3055_p3 = scmp.lt.s32.totalorder %s503_s0, %s503_s0 }
  0x30   : > { %p3048_p6 = scmp.ne.s32.totalorder %s503_s0, %s3047_s14  ;;  %p3056_p7 = scmp.lt.s32.totalorder %s3047_s14, %s3047_s14 }
  0x32   : > { %p3050_p9 = pnand %p3048_p6, %p3036_p0  ;;  %p3057_p8 = por %p3056_p7, %p3055_p3 }
  0x34   : > { %p3051_p11 = pneg %p3050_p9 }
  0x36   : > { %p3058_p12 = pnand %p3057_p8, %p3051_p11 }
  0x38   : > { %3061 = shalt.err (!%p3058_p12)
}
  0x39   : > { %s3211_s16 = smov 16   ;;  %s3212_s19 = smov 1  }
  0x3a   : > { %2870 = dma.hbm_to_vmem [thread:$0]  (!%p3365_p10), %s3930_s1, 64, %s503_s0, [#allocation4], %s3211_s16, %s3211_s16, %s3212_s19  }
  0x3b   : > { %s3213_s20 = smov [#allocation6]   ;;  %s3931_s3 = sld [smem:[#allocation21_spill]] }
  0x3c   : > { %s519_s21 = sshll.u32 %s3213_s20, 4  ;;  %s520_s21 = int_to_ptr.vmem [resolvable:$true] %s519_s21 }
  0x41   : > { %s3062_s13 = scalar_lea.hbm %s3931_s3, 16 }
  0x42   : > { %p3063_p3 = scmp.ne.s32.totalorder %s3931_s3, %s3062_s13  ;;  %p3069_p12 = scmp.lt.u32.totalorder %s3062_s13, %s3931_s3 }
  0x44   : > { %p3065_p7 = pnand %p3063_p3, %p3036_p0 }
  0x46   : > { %p3066_p8 = pneg %p3065_p7 }
  0x48   : > { %p3071_p13 = pnand %p3069_p12, %p3066_p8 }
  0x4a   : > { %3074 = shalt.err (!%p3071_p13)
}
  0x4b   : > { %s3075_s0 = scalar_lea.vmem %s520_s21, 16  ;;  %s3082_s12 = scalar_lea.vmem %s520_s21, 32 }
  0x4c   : > { %p3076_p1 = scmp.ne.s32.totalorder %s520_s21, %s3075_s0  ;;  %p3083_p5 = scmp.lt.s32.totalorder %s520_s21, %s520_s21 }
  0x4d   : > { %p3084_p6 = scmp.lt.s32.totalorder %s3082_s12, %s3075_s0 }
  0x4e   : > { %p3078_p2 = pnand %p3076_p1, %p3036_p0 }
  0x4f   : > { %p3085_p9 = por %p3084_p6, %p3083_p5 }
  0x50   : > { %p3079_p4 = pneg %p3078_p2 }
  0x52   : > { %p3086_p11 = pnand %p3085_p9, %p3079_p4 }
  0x54   : > { %3089 = shalt.err (!%p3086_p11)
}
  0x55   : > { %2873 = dma.hbm_to_vmem [thread:$0]  (!%p3365_p10), %s3931_s3, 16, %s520_s21, [#allocation7]  }
  0x56   : > { %s38_s9 = sadd.s32 1, %s3204_s25  ;;  %s298_s13 = sadd.s32 1, %s3196_s23 }
  0x57   : > { %p39_p0 = scmp.ge.s32.totalorder %s38_s9, 2  ;;  %s570_s16 = sand.u32 1, %s3208_s26  }
  0x58   : > { %s572_s19 = sand.u32 1, %s3196_s23   ;;  %s2663_s2 = sshll.u32 %s3204_s25, 8 }
  0x59   : > { %s3973_s9 = smov (%p39_p0, %s38_s9), 0  ;;  %s2592_s17 = sshll.u32 %s572_s19, 4 }
  0x5a   : > { %3932 = sst [smem:[#allocation16_spill]] %s3973_s9  ;;  %s295_s15 = ssub.s32 %s3204_s25, %s3973_s9 }
  0x5b   : > { %p296_p3 = scmp.eq.s32.totalorder %s295_s15, 0  ;;  %s3933_s10 = sld [smem:[#allocation26_spill]] }
  0x5c   : > { %s574_s21 = scalar_lea.vmem [#allocation8], %s2592_s17  ;;  %s3435_s11 = scalar_lea.sflag [#allocation4], %s570_s16 }
  0x5d   : > { %s581_s0 = sshll.u32 %s574_s21, 4  ;;  %p3935_p7 = scmp.ne.s32.totalorder %s3929_s18, 0  ;;  %s3433_s0 = int_to_ptr.vmem [resolvable:$true] %s581_s0 }
  0x5e   : > { %s3431_s12 = scalar_select %p296_p3, %s3196_s23, %s298_s13  }
  0x5f   : > { %p3092_p8 = pneg %p3935_p7 }
  0x60   : > { %3934 = sst [smem:[#allocation17_spill]] %s3431_s12 }
  0x61   : > { %s3428_s14 = scalar_lea.hbm %s3933_s10, %s2663_s2  ;;  %s3095_s15 = scalar_lea.hbm %s3933_s10, 512 }
  0x62   : > { %s3090_s8 = scalar_lea.hbm %s3428_s14, 256  ;;  %p3096_p1 = scmp.lt.u32.totalorder %s3428_s14, %s3933_s10 }
  0x63   : > { %p3091_p10 = scmp.ne.s32.totalorder %s3428_s14, %s3090_s8  ;;  %p3097_p2 = scmp.lt.u32.totalorder %s3095_s15, %s3090_s8 }
  0x64   : > { %p3099_p5 = scmp.lt.u32.totalorder %s3090_s8, %s3428_s14 }
  0x65   : > { %p3093_p12 = pnand %p3092_p8, %p3091_p10  ;;  %p3098_p4 = por %p3097_p2, %p3096_p1 }
  0x67   : > { %p3094_p13 = pneg %p3093_p12  ;;  %p3100_p6 = por %p3099_p5, %p3098_p4 }
  0x69   : > { %p3101_p9 = pnand %p3100_p6, %p3094_p13 }
  0x6b   : > { %3104 = shalt.err (!%p3101_p9)
}
  0x6c   : > { %s3105_s13 = scalar_lea.vmem %s3433_s0, 256  ;;  %s3214_s16 = smov [#allocation8]  }
  0x6d   : > { %p3106_p11 = scmp.ne.s32.totalorder %s3433_s0, %s3105_s13  ;;  %s3110_s30 = sshll.u32 %s3214_s16, 4  ;;  %s3111_s30 = int_to_ptr.vmem [resolvable:$false] %s3110_s30 }
  0x6e   : > { %s3112_s21 = scalar_lea.vmem %s3111_s30, 512  ;;  %p3113_p10 = scmp.lt.s32.totalorder %s3433_s0, %s3111_s30 }
  0x6f   : > { %p3108_p0 = pnand %p3106_p11, %p3092_p8  ;;  %p3114_p12 = scmp.lt.s32.totalorder %s3112_s21, %s3105_s13 }
  0x71   : > { %p3109_p3 = pneg %p3108_p0  ;;  %p3115_p1 = por %p3114_p12, %p3113_p10 }
  0x73   : > { %p3116_p2 = pnand %p3115_p1, %p3109_p3 }
  0x75   : > { %3119 = shalt.err (!%p3116_p2)
}
  0x76   : > { %s3215_s8 = smov 64   ;;  %s3216_s19 = smov 4  }
  0x77   : > { %2877 = dma.hbm_to_vmem [thread:$0]  (!%p3935_p7), %s3428_s14, 256, %s3433_s0, %s3435_s11, %s3215_s8, %s3215_s8, %s3216_s19  }
  0x78   : > { %p3936_p8 = scmp.ne.s32.totalorder %s3927_s29, 0 }
  0x79   : > { %p3937_p13 = scmp.eq.s32.totalorder (!%p3936_p8), %s3342_s27, 0 }
  0x7a   : > { %625 = sbr.rel (%p3936_p8) target bundleno = 3658 (0xe4a), region = 84 }
  0x81   : > { %3171 = dma.done.wait (%p3937_p13), [#allocation4], 64   ;;  %p3938_p4 = pmov %p3937_p13 }
  0x83   : > { %3173 = vsyncadd (%p3938_p4), [#allocation4], 4294967232  ;;  %p3939_p5 = pmov %p3938_p4 }
  0x84   : > { %p3940_p6 = pmov %p3938_p4 }
  0x85   : > { %3175 = dma.done.wait (%p3939_p5), [#allocation7], 16  }
  0x86   : > { %3177 = vsyncadd (%p3940_p6), [#allocation7], 4294967280  ;;  %s635_s18 = sand.u32 1, %s3342_s27   ;;  %s637_s14 = sand.u32 1, %s3192_s22  }
  0x87   : > { %s3475_s0 = sshll.u32 %s637_s14, 4  ;;  %s636_s29 = scalar_lea.sflag [#allocation4], %s635_s18 }
  0x88   : > { %p3941_p7 = scmp.ne.s32.totalorder %s3926_s28, 0 }
  0x8a   : > { %3179 = dma.done.wait (%p3941_p7), %s636_s29, 256  }
  0x8b   : > { %3181 = vsyncadd (%p3941_p7), %s636_s29, 4294967040  ;;  %p734_p9 = scmp.lt.s32.totalorder %s3200_s24, 1  ;;  %s3942_s4 = sld [smem:[#allocation22_spill]] }
  0x8c   : > { %s3943_s6 = sld [smem:[#allocation23_spill]]  ;;  %s3947_s8 = sld [smem:[#allocation29_spill]] }
  0x8d   : > { %s3484_s2 = scalar_select %p734_p9, %s3200_s24, 1 }
  0x8e   : > { %s3948_s14 = sld [smem:[#allocation28_spill]]  ;;  %s3949_s11 = sld [smem:[#allocation30_spill]] }
  0x8f   : > { %s2664_s15 = sshll.u32 %s3484_s2, 4  ;;  %s2666_s12 = sshll.u32 %s3484_s2, 5 }
  0x90   : > { %s3950_s20 = sld [smem:[#allocation31_spill]]  ;;  %p2605_p11 = scmp.ne.s32.totalorder %s3200_s24, 0 }
  0x91   : > { %s3494_s30 = scalar_lea.vmem %s3942_s4, %s2664_s15  ;;  %s3946_s4 = sld [smem:[#allocation27_spill]]  ;;  %vm785_vm0 = vcmask (!%p2605_p11), 261120   ;;  %v2607_v43 = vld [vmem:[#allocation6] ss:$0 sm:$0xff] (!%p2605_p11) }
  0x92   : > { %s3499_s19 = scalar_lea.vmem %s3943_s6, %s2664_s15  ;;  %s766_s6 = scalar_lea.vmem %s3947_s8, %s3484_s2 }
  0x93   : > { %778 = sbr.rel (%p2605_p11) target bundleno = 476 (0x1dc), region = 100  ;;  %s3951_s16 = sld [smem:[#allocation18_spill]] (!%p2605_p11) }
  0x94   : > { %s3525_s29 = scalar_lea.vmem %s3948_s14, %s2666_s12  ;;  %s769_s10 = scalar_lea.vmem %s3949_s11, %s3484_s2 }
  0x95   : > { %s3952_s3 = sld [smem:[#allocation20_spill]] (!%p2605_p11) }
  0x96   : > { %s772_s9 = scalar_lea.vmem %s3950_s20, %s3484_s2 }
  0x97   : > { %s758_s25 = scalar_lea.vmem %s3946_s4, %s3484_s2 }
  0x99   : > { %v779_v0 = vld [vmem:[%s3951_s16] sm:$0xff] (!%p2605_p11)  ;;  %v781_v1 = vld [vmem:[%s3951_s16 + $0x10] sm:$0xff] (!%p2605_p11)  ;;  %v780_v2 = vld [vmem:[%s3951_s16 + $0x8] sm:$0xff] (!%p2605_p11) }
  0x9a   : > { %v786_v3 = vsel %vm785_vm0, %v779_v0, 0.0  ;;  %v792_v4 = vsel %vm785_vm0, %v781_v1, 0.0  ;;  %v782_v5 = vld [vmem:[%s3951_s16 + $0x18] sm:$0xff]  ;;  %v789_v6 = vsel %vm785_vm0, %v780_v2, 0.0 }
  0x9b   : > { %787 = vadd.xlane.f32.xlu0 %v786_v3  ;;  %793 = vadd.xlane.f32.xlu1 %v792_v4  ;;  %v795_v7 = vsel %vm785_vm0, %v782_v5, 0.0  ;;  %v2606_v41 = vld [vmem:[%s3952_s3] ss:$0 sm:$0xff] }
  0x9f   : > { %790 = vadd.xlane.f32.xlu0 %v789_v6  ;;  %796 = vadd.xlane.f32.xlu1 %v795_v7 }
 0x128   : > { %v788_v8 = vpop.xlane.xlu0 %787  ;;  %v794_v9 = vpop.xlane.xlu1 %793 }
 0x129   : > { %v799_v10 = vmul.f32 0.03125, %v788_v8  ;;  %v801_v11 = vmul.f32 0.03125, %v794_v9 }
 0x12b   : > { %v803_v12 = vsub.f32 %v779_v0, %v799_v10  ;;  %v805_v13 = vsub.f32 %v781_v1, %v801_v11 }
 0x12c   : > { %v791_v14 = vpop.xlane.xlu0 %790  ;;  %v797_v15 = vpop.xlane.xlu1 %796 }
 0x12d   : > { %v800_v16 = vmul.f32 0.03125, %v791_v14  ;;  %v802_v17 = vmul.f32 0.03125, %v797_v15  ;;  %v807_v18 = vmul.f32 %v803_v12, %v803_v12  ;;  %v809_v19 = vmul.f32 %v805_v13, %v805_v13 }
 0x12f   : > { %v804_v20 = vsub.f32 %v780_v2, %v800_v16  ;;  %v806_v21 = vsub.f32 %v782_v5, %v802_v17  ;;  %v811_v22 = vsel %vm785_vm0, %v807_v18, 0.0  ;;  %v817_v23 = vsel %vm785_vm0, %v809_v19, 0.0 }
 0x130   : > { %812 = vadd.xlane.f32.xlu0 %v811_v22 }
 0x131   : > { %v808_v24 = vmul.f32 %v804_v20, %v804_v20  ;;  %v810_v25 = vmul.f32 %v806_v21, %v806_v21 }
 0x133   : > { %v814_v26 = vsel %vm785_vm0, %v808_v24, 0.0  ;;  %v820_v27 = vsel %vm785_vm0, %v810_v25, 0.0 }
 0x134   : > { %818 = vadd.xlane.f32.xlu0 %v817_v23  ;;  %815 = vadd.xlane.f32.xlu1 %v814_v26 }
 0x138   : > { %821 = vadd.xlane.f32.xlu1 %v820_v27 }
 0x1bd   : > { %v813_v28 = vpop.xlane.xlu0 %812 }
 0x1be   : > { %v823_v29 = vmul.f32 0.03125, %v813_v28 }
 0x1c0   : > { %v827_v30 = vadd.f32 1e-05, %v823_v29 }
 0x1c1   : > { %v816_v31 = vpop.xlane.xlu1 %815  ;;  %v819_v32 = vpop.xlane.xlu0 %818 }
 0x1c2   : > { %2950 = vrsqrt.f32 %v827_v30  ;;  %v824_v33 = vmul.f32 0.03125, %v816_v31  ;;  %v825_v34 = vmul.f32 0.03125, %v819_v32 }
 0x1c4   : > { %v828_v35 = vadd.f32 1e-05, %v824_v33  ;;  %v829_v36 = vadd.f32 1e-05, %v825_v34 }
 0x1c5   : > { %v822_v37 = vpop.xlane.xlu1 %821 }
 0x1c6   : > { %2952 = vrsqrt.f32 %v828_v35  ;;  %v826_v38 = vmul.f32 0.03125, %v822_v37 }
 0x1c7   : > { %2954 = vrsqrt.f32 %v829_v36 }
 0x1c8   : > { %v830_v39 = vadd.f32 1e-05, %v826_v38 }
 0x1ca   : > { %2956 = vrsqrt.f32 %v830_v39 }
 0x1cc   : > { %v2951_v40 = vpop.eup %2950 }
 0x1cd   : > { %v835_v42 = vmul.f32 %v2951_v40, %v803_v12 }
 0x1cf   : > { %v845_v44 = vmul.f32 %v2606_v41, %v835_v42 }
 0x1d0   : > { %v2953_v45 = vpop.eup %2952 }
 0x1d1   : > { %v2955_v46 = vpop.eup %2954  ;;  %v855_v47 = vadd.f32 %v2607_v43, %v845_v44  ;;  %v836_v48 = vmul.f32 %v2953_v45, %v804_v20 }
 0x1d2   : > { %v837_v49 = vmul.f32 %v2955_v46, %v805_v13 }
 0x1d3   : > { %859 = vst.msk [vmem:[#allocation2] sm:$0xff] %vm785_vm0, %v855_v47  ;;  %v846_v50 = vmul.f32 %v2606_v41, %v836_v48 }
 0x1d4   : > { %v2957_v51 = vpop.eup %2956  ;;  %v847_v52 = vmul.f32 %v2606_v41, %v837_v49 }
 0x1d5   : > { %v856_v53 = vadd.f32 %v2607_v43, %v846_v50  ;;  %v838_v54 = vmul.f32 %v2957_v51, %v806_v21 }
 0x1d6   : > { %v857_v55 = vadd.f32 %v2607_v43, %v847_v52 }
 0x1d7   : > { %860 = vst.msk [vmem:[#allocation2 + $0x8] sm:$0xff] %vm785_vm0, %v856_v53  ;;  %v848_v56 = vmul.f32 %v2606_v41, %v838_v54 }
 0x1d8   : > { %861 = vst.msk [vmem:[#allocation2 + $0x10] sm:$0xff] %vm785_vm0, %v857_v55 }
 0x1d9   : > { %v858_v57 = vadd.f32 %v2607_v43, %v848_v56 }
 0x1db   : > { %862 = vst.msk [vmem:[#allocation2 + $0x18] sm:$0xff] %vm785_vm0, %v858_v57 }
 0x1dc PF: > { %v2968_v58 = vld [vmem:[%s3494_s30] sm:$0xff]   ;;  %v2969_v59 = vld [vmem:[%s3494_s30 + $0x8] sm:$0xff]   ;;  %vm904_vm1 = vcmask 261120   ;;  %v3217_v2 = vmov 0.0   ;;  %s3953_s17 = scalar_lea.vmem %s3888_s5, %s3484_s2  ;;  %vm3218_vm2 = vmmov 0   ;;  %s3219_s28 = smov 96   ;;  %v1173_v24 = vlaneseq }
 0x1dd   : > { %2721 = vmatprep.subr.bf16.mxu0 %v2968_v58  ;;  %v3565_v60 = vld [vmem:[#allocation2] sm:$0xff]  ;;  %2729 = vmatprep.subr.bf16.mxu1 %v3217_v2  ;;  %vm974_vm3 = vcmask 130048   ;;  %vm1197_vm4 = vcmask 64512   ;;  %s3220_s20 = smov 64   ;;  %vm1251_vm5 = vcmask 1043456   ;;  %s3221_s4 = smov 80  }
 0x1de   : > { %v3567_v61 = vld [vmem:[#allocation2 + $0x8] sm:$0xff]  ;;  %2722 = vmatpush3.bf16.msra.mxu0 %v2968_v58  ;;  %v2612_v3 = vld [vmem:[%s3953_s17] ss:$0 sm:$0xff]  ;;  %2731 = vmatprep.mubr.msk.bf16.mxu1 %vm3218_vm2, %v3217_v2  ;;  %v1174_v27 = vshrl.u32 %v1173_v24, 7  ;;  %v868_v28 = vld [vmem:[#allocation3 + $0x1] sm:$0x1]  ;;  %s3954_s15 = scalar_lea.vmem %s3890_s7, %s3484_s2 }
 0x1df   : > { %v3569_v62 = vld [vmem:[#allocation2 + $0x10] sm:$0xff]  ;;  %v879_v63 = vpack.c.bf16 %v3567_v61, %v3565_v60  ;;  %2723 = vmatprep.subr.bf16.mxu0 %v2969_v59  ;;  %v867_v25 = vld [vmem:[#allocation3] sm:$0x1]  ;;  %v2609_v31 = vadd.f32 -1.0, %v868_v28  ;;  %v869_v32 = vld [vmem:[#allocation3 + $0x2] sm:$0x1] }
 0x1e0   : > { %v2608_v26 = vadd.f32 -1.0, %v867_v25  ;;  %v1175_v30 = vsub.s32 0, %v1174_v27  ;;  %v2610_v35 = vadd.f32 -1.0, %v869_v32  ;;  %v870_v37 = vld [vmem:[#allocation3 + $0x3] sm:$0x1]  ;;  %s3222_s13 = smov 112  }
 0x1e1   : > { %2725 = vmatprep.mubr.msk.bf16.mxu0 %vm904_vm1, %v879_v63  ;;  %v876_v34 = vmul.f32 1e+09, %v2609_v31  ;;  %v2611_v45 = vadd.f32 -1.0, %v870_v37  ;;  %s3223_s21 = smov 48   ;;  %s3224_s23 = smov 16   ;;  %vm2223_vm6 = vcmask 523264  }
 0x1e2   : > { %v3573_v0 = vld [vmem:[#allocation2 + $0x18] sm:$0xff]  ;;  %2724 = vmatpush3.bf16.msra.mxu0 %v2969_v59  ;;  %v875_v29 = vmul.f32 1e+09, %v2608_v26  ;;  %v877_v44 = vmul.f32 1e+09, %v2610_v35  ;;  %s3955_s8 = scalar_lea.vmem [#allocation8], %s3475_s0 }
 0x1e3   : > { %v880_v1 = vpack.c.bf16 %v3573_v0, %v3569_v62  ;;  %2735 = vmatprep.subr.bf16.mxu0 %v3217_v2  ;;  %v3629_v43 = vrot.slane %v876_v34, %v1175_v30  ;;  %v878_v54 = vmul.f32 1e+09, %v2611_v45  ;;  %s3956_s18 = smov %s3955_s8  ;;  %s3957_s1 = sld [smem:[#allocation24_spill]] }
 0x1e4   : > { %v3626_v33 = vrot.slane %v875_v29, %v1175_v30  ;;  %v3633_v53 = vrot.slane %v877_v44, %v1175_v30  ;;  %s3959_s17 = sld [smem:[#allocation25_spill]]  ;;  %p2658_p0 = scmp.ne.s32.totalorder %s3200_s24, 1 }
 0x1e5   : > { %2726 = vmatmul.mubr.msk.bf16.vlgmr.msra.gmra.mrb[0].mxu0 %vm904_vm1, %v880_v1 }
 0x1e6   : > { %2737 = vmatprep.mubr.msk.bf16.mxu0 %vm3218_vm2, %v3217_v2 }
 0x1e9   : > { %s3958_s3 = scalar_lea.vmem %s3957_s1, %s3484_s2 }
 0x2b8   : > { %v2727_v4 = vpop.f32.mrb[0].mxu0 }
 0x2b9   : > { %v954_v5 = vadd.f32 %v2727_v4, %v2612_v3  ;;  %v945_v6 = vpop.f32.mrb[1].mxu0 }
 0x2ba   : > { %v946_v7 = vadd.f32 %v2612_v3, %v945_v6  ;;  %v2728_v8 = vpop.f32.mrb[2].mxu0 }
 0x2bb   : > { %v3590_v9 = vpack.c.bf16 %v954_v5, %v954_v5  ;;  %v957_v10 = vadd.f32 %v2728_v8, %v2612_v3  ;;  %v948_v11 = vpop.f32.mrb[3].mxu0 }
 0x2bc   : > { %v3592_v12 = vpack.c.bf16 %v946_v7, %v946_v7  ;;  %v949_v13 = vadd.f32 %v2612_v3, %v948_v11  ;;  %v3637_v3 = vrot.slane %v878_v54, %v1175_v30 }
 0x2bd   : > { %1069 = vrot.lane.b32.xlu1 %v3590_v9, %s3219_s28  ;;  %v3596_v14 = vpack.c.bf16 %v957_v10, %v957_v10 }
 0x2be   : > { %972 = vrot.lane.b32.xlu0 %v3592_v12, %s3219_s28  ;;  %v3598_v15 = vpack.c.bf16 %v949_v13, %v949_v13 }
 0x2c1   : > { %1117 = vrot.lane.b32.xlu1 %v3596_v14, %s3219_s28 }
 0x2c2   : > { %1021 = vrot.lane.b32.xlu0 %v3598_v15, %s3219_s28  ;;  %s3960_s28 = scalar_lea.vmem %s3959_s17, %s3484_s2 }
 0x32f   : > { %v1070_v18 = vpop.permute.xlu1 %1069 }
 0x330   : > { %v973_v16 = vpop.permute.xlu0 %972  ;;  %v1075_v21 = vsel %vm974_vm3, %v1070_v18, 0 }
 0x331   : > { %v979_v17 = vsel %vm974_vm3, %v973_v16, 0 }
 0x332   : > { %2730 = vmatpush3.bf16.xpose.msra.mxu1 %v979_v17 }
 0x333   : > { %2741 = vmatprep.subr.bf16.mxu1 %v3217_v2  ;;  %v1118_v22 = vpop.permute.xlu1 %1117 }
 0x334   : > { %v1022_v19 = vpop.permute.xlu0 %1021  ;;  %v1123_v23 = vsel %vm974_vm3, %v1118_v22, 0 }
 0x335   : > { %v1027_v20 = vsel %vm974_vm3, %v1022_v19, 0 }
 0x336   : > { %2736 = vmatpush3.bf16.xpose.msra.mxu0 %v1027_v20 }
 0x337   : > { %2747 = vmatprep.subr.bf16.mxu0 %v3217_v2 }
 0x339   : > { %2732 = vmatmul.mubr.msk.bf16.vlgmr.msra.gmra.mrb[0].mxu1 %vm974_vm3, %v3592_v12 }
 0x33a   : > { %2742 = vmatpush3.bf16.xpose.msra.mxu1 %v1075_v21  ;;  %2743 = vmatprep.mubr.msk.bf16.mxu1 %vm3218_vm2, %v3217_v2 }
 0x33b   : > { %2753 = vmatprep.subr.bf16.mxu1 %v3217_v2 }
 0x33d   : > { %2738 = vmatmul.mubr.msk.bf16.vlgmr.msra.gmra.mrb[4].mxu0 %vm974_vm3, %v3598_v15 }
 0x33e   : > { %2748 = vmatpush3.bf16.xpose.msra.mxu0 %v1123_v23  ;;  %2749 = vmatprep.mubr.msk.bf16.mxu0 %vm3218_vm2, %v3217_v2 }
 0x33f   : > { %2759 = vmatprep.subr.bf16.mxu0 %v3217_v2 }
 0x341   : > { %2744 = vmatmul.mubr.msk.bf16.vlgmr.msra.gmra.mrb[4].mxu1 %vm974_vm3, %v3590_v9 }
 0x342   : > { %2755 = vmatprep.mubr.msk.bf16.mxu1 %vm3218_vm2, %v3217_v2 }
 0x345   : > { %2750 = vmatmul.mubr.msk.bf16.vlgmr.msra.gmra.mrb[8].mxu0 %vm974_vm3, %v3596_v14 }
 0x346   : > { %2761 = vmatprep.mubr.msk.bf16.mxu0 %vm3218_vm2, %v3217_v2 }
 0x40c   : > { %v1015_v36 = vpop.f32.mrb[0].mxu1 }
 0x40d   : > { %v1165_v38 = vmul.f32 0.25, %v1015_v36  ;;  %v2733_v39 = vpop.f32.mrb[1].mxu1 }
 0x40e   : > { %v1018_v40 = vpop.f32.mrb[2].mxu1 }
 0x40f   : > { %v2734_v41 = vpop.f32.mrb[3].mxu1  ;;  %v1193_v42 = vadd.f32 %v3626_v33, %v1165_v38 }
 0x410   : > { %v1063_v46 = vpop.f32.mrb[4].mxu0 }
 0x411   : > { %v1166_v47 = vmul.f32 0.25, %v1063_v46  ;;  %v2739_v48 = vpop.f32.mrb[5].mxu0  ;;  %v1198_v49 = vsel %vm1197_vm4, %v1193_v42, -inf }
 0x412   : > { %1199 = vmax.xlane.f32.xlu0 %v1198_v49  ;;  %v1066_v50 = vpop.f32.mrb[6].mxu0 }
 0x413   : > { %v2740_v51 = vpop.f32.mrb[7].mxu0  ;;  %v1194_v52 = vadd.f32 %v3629_v43, %v1166_v47 }
 0x414   : > { %v1111_v55 = vpop.f32.mrb[4].mxu1 }
 0x415   : > { %v1167_v56 = vmul.f32 0.25, %v1111_v55  ;;  %v2745_v57 = vpop.f32.mrb[5].mxu1  ;;  %v1201_v58 = vsel %vm1197_vm4, %v1194_v52, -inf }
 0x416   : > { %v1114_v59 = vpop.f32.mrb[6].mxu1  ;;  %1202 = vmax.xlane.f32.xlu1 %v1201_v58 }
 0x417   : > { %v2746_v63 = vpop.f32.mrb[7].mxu1  ;;  %v1195_v1 = vadd.f32 %v3633_v53, %v1167_v56 }
 0x418   : > { %v1159_v4 = vpop.f32.mrb[8].mxu0 }
 0x419   : > { %v1168_v5 = vmul.f32 0.25, %v1159_v4  ;;  %v2751_v6 = vpop.f32.mrb[9].mxu0  ;;  %v1204_v7 = vsel %vm1197_vm4, %v1195_v1, -inf }
 0x41a   : > { %1205 = vmax.xlane.f32.xlu0 %v1204_v7  ;;  %v1162_v8 = vpop.f32.mrb[10].mxu0 }
 0x41b   : > { %v2752_v10 = vpop.f32.mrb[11].mxu0  ;;  %v1196_v11 = vadd.f32 %v3637_v3, %v1168_v5 }
 0x41d   : > { %v1207_v13 = vsel %vm1197_vm4, %v1196_v11, -inf }
 0x41e   : > { %1208 = vmax.xlane.f32.xlu0 %v1207_v13 }
 0x427   : > { %1246 = vrot.lane.b32.xlu1 %v3592_v12, %s3220_s20 }
 0x49f   : > { %v1200_v16 = vpop.xlane.xlu0 %1199 }
 0x4a0   : > { %v1210_v17 = vsub.f32 %v1193_v42, %v1200_v16 }
 0x4a2   : > { %v1214_v18 = vmul.f32 1.442695, %v1210_v17 }
 0x4a3   : > { %v1203_v19 = vpop.xlane.xlu1 %1202 }
 0x4a4   : > { %2978 = vpow2.f32 %v1214_v18  ;;  %v1211_v20 = vsub.f32 %v1194_v52, %v1203_v19 }
 0x4a6   : > { %v1216_v21 = vmul.f32 1.442695, %v1211_v20 }
 0x4a7   : > { %v1247_v22 = vpop.permute.xlu1 %1246  ;;  %v1206_v28 = vpop.xlane.xlu0 %1205 }
 0x4a8   : > { %2980 = vpow2.f32 %v1216_v21  ;;  %v1253_v23 = vsel %vm1251_vm5, %v1247_v22, 0  ;;  %v1212_v30 = vsub.f32 %v1195_v1, %v1206_v28 }
 0x4a9   : > { %2754 = vmatpush3.bf16.msra.mxu1 %v1253_v23 }
 0x4aa   : > { %2765 = vmatprep.subr.bf16.mxu1 %v3217_v2  ;;  %v1218_v32 = vmul.f32 1.442695, %v1212_v30 }
 0x4ab   : > { %v1209_v29 = vpop.xlane.xlu0 %1208 }
 0x4ac   : > { %v1213_v31 = vsub.f32 %v1196_v11, %v1209_v29  ;;  %2982 = vpow2.f32 %v1218_v32 }
 0x4ae   : > { %v2979_v24 = vpop.eup %2978  ;;  %v1220_v34 = vmul.f32 1.442695, %v1213_v31 }
 0x4af   : > { %v1222_v25 = vsel %vm1197_vm4, %v2979_v24, 0.0 }
 0x4b0   : > { %1223 = vadd.xlane.f32.xlu1 %v1222_v25  ;;  %2984 = vpow2.f32 %v1220_v34 }
 0x4b2   : > { %v2981_v26 = vpop.eup %2980 }
 0x4b3   : > { %v1225_v27 = vsel %vm1197_vm4, %v2981_v26, 0.0 }
 0x4b4   : > { %1226 = vadd.xlane.f32.xlu0 %v1225_v27 }
 0x4b6   : > { %v2983_v35 = vpop.eup %2982 }
 0x4b7   : > { %v1228_v37 = vsel %vm1197_vm4, %v2983_v35, 0.0 }
 0x4ba   : > { %v2985_v36 = vpop.eup %2984 }
 0x4bb   : > { %v1231_v38 = vsel %vm1197_vm4, %v2985_v36, 0.0 }
 0x4c1   : > { %1343 = vrot.lane.b32.xlu1 %v3590_v9, %s3220_s20 }
 0x4c5   : > { %1391 = vrot.lane.b32.xlu1 %v3596_v14, %s3220_s20 }
 0x4ca   : > { %1295 = vrot.lane.b32.xlu0 %v3598_v15, %s3220_s20 }
 0x4e9   : > { %1229 = vadd.xlane.f32.xlu1 %v1228_v37  ;;  %1232 = vadd.xlane.f32.xlu0 %v1231_v38 }
 0x4fa   : > { %1491 = vrot.lane.b32.xlu1 %v3598_v15, %s3221_s4 }
 0x4fe   : > { %1489 = vrot.lane.b32.xlu1 %v3598_v15, %s3222_s13 }
 0x4ff   : > { %1441 = vrot.lane.b32.xlu0 %v3592_v12, %s3221_s4 }
 0x502   : > { %1591 = vrot.lane.b32.xlu1 %v3596_v14, %s3221_s4 }
 0x503   : > { %1439 = vrot.lane.b32.xlu0 %v3592_v12, %s3222_s13 }
 0x506   : > { %1589 = vrot.lane.b32.xlu1 %v3596_v14, %s3222_s13 }
 0x507   : > { %1541 = vrot.lane.b32.xlu0 %v3590_v9, %s3221_s4 }
 0x50b   : > { %1539 = vrot.lane.b32.xlu0 %v3590_v9, %s3222_s13 }
 0x53d   : > { %v1224_v39 = vpop.xlane.xlu1 %1223 }
 0x53e   : > { %2986 = vrcp.f32 %v1224_v39 }
 0x541   : > { %v1227_v40 = vpop.xlane.xlu0 %1226  ;;  %v1344_v45 = vpop.permute.xlu1 %1343 }
 0x542   : > { %2988 = vrcp.f32 %v1227_v40  ;;  %v1349_v49 = vsel %vm1251_vm5, %v1344_v45, 0 }
 0x545   : > { %v1296_v41 = vpop.permute.xlu0 %1295  ;;  %v1392_v51 = vpop.permute.xlu1 %1391 }
 0x546   : > { %v1301_v42 = vsel %vm1251_vm5, %v1296_v41, 0  ;;  %v1397_v54 = vsel %vm1251_vm5, %v1392_v51, 0 }
 0x547   : > { %2760 = vmatpush3.bf16.msra.mxu0 %v1301_v42 }
 0x548   : > { %v2987_v44 = vpop.eup %2986  ;;  %2771 = vmatprep.subr.bf16.mxu0 %v3217_v2 }
 0x549   : > { %v1238_v46 = vmul.f32 %v2987_v44, %v2979_v24 }
 0x54b   : > { %v1242_v47 = vpack.c.bf16 %v1238_v46, %v1238_v46 }
 0x54c   : > { %v2989_v48 = vpop.eup %2988 }
 0x54d   : > { %v1239_v50 = vmul.f32 %v2989_v48, %v2981_v26  ;;  %2756 = vmatmul.mubr.msk.bf16.vlgmr.msra.gmra.mrb[8].mxu1 %vm1197_vm4, %v1242_v47 }
 0x54e   : > { %2766 = vmatpush3.bf16.msra.mxu1 %v1349_v49  ;;  %2767 = vmatprep.mubr.msk.bf16.mxu1 %vm3218_vm2, %v3217_v2 }
 0x54f   : > { %v1243_v52 = vpack.c.bf16 %v1239_v50, %v1239_v50  ;;  %2777 = vmatprep.subr.bf16.mxu1 %v3217_v2 }
 0x551   : > { %2762 = vmatmul.mubr.msk.bf16.vlgmr.msra.gmra.mrb[12].mxu0 %vm1197_vm4, %v1243_v52 }
 0x552   : > { %2772 = vmatpush3.bf16.msra.mxu0 %v1397_v54  ;;  %2773 = vmatprep.mubr.msk.bf16.mxu0 %vm3218_vm2, %v3217_v2 }
 0x553   : > { %2783 = vmatprep.subr.bf16.mxu0 %v3217_v2 }
 0x576   : > { %v1230_v55 = vpop.xlane.xlu1 %1229  ;;  %v1233_v56 = vpop.xlane.xlu0 %1232 }
 0x577   : > { %2990 = vrcp.f32 %v1230_v55 }
 0x578   : > { %2992 = vrcp.f32 %v1233_v56 }
 0x57a   : > { %v1442_v57 = vpop.permute.xlu0 %1441  ;;  %v1492_v58 = vpop.permute.xlu1 %1491 }
 0x57b   : > { %v1447_v8 = vsel %vm974_vm3, %v1442_v57, 0  ;;  %v1497_v11 = vsel %vm974_vm3, %v1492_v58, 0 }
 0x57e   : > { %v1440_v6 = vpop.permute.xlu0 %1439  ;;  %v1490_v10 = vpop.permute.xlu1 %1489 }
 0x581   : > { %v2991_v59 = vpop.eup %2990 }
 0x582   : > { %v2993_v63 = vpop.eup %2992  ;;  %v1240_v1 = vmul.f32 %v2991_v59, %v2983_v35  ;;  %v1542_v13 = vpop.permute.xlu0 %1541 }
 0x583   : > { %v1241_v4 = vmul.f32 %v2993_v63, %v2985_v36  ;;  %v1592_v16 = vpop.permute.xlu1 %1591  ;;  %v1547_v17 = vsel %vm974_vm3, %v1542_v13, 0 }
 0x584   : > { %v1244_v5 = vpack.c.bf16 %v1240_v1, %v1240_v1  ;;  %v1597_v18 = vsel %vm974_vm3, %v1592_v16, 0 }
 0x585   : > { %v1245_v7 = vpack.c.bf16 %v1241_v4, %v1241_v4 }
 0x586   : > { %2768 = vmatmul.mubr.msk.bf16.vlgmr.msra.gmra.mrb[12].mxu1 %vm1197_vm4, %v1244_v5  ;;  %v1540_v19 = vpop.permute.xlu0 %1539 }
 0x587   : > { %2774 = vmatmul.mubr.msk.bf16.vlgmr.msra.gmra.mrb[16].mxu0 %vm1197_vm4, %v1245_v7  ;;  %2778 = vmatpush3.bf16.xpose.msra.mxu1 %v1447_v8  ;;  %v1590_v20 = vpop.permute.xlu1 %1589 }
 0x588   : > { %2784 = vmatpush3.bf16.xpose.msra.mxu0 %v1497_v11  ;;  %2779 = vmatprep.mubr.msk.bf16.mxu1 %vm3218_vm2, %v3217_v2 }
 0x589   : > { %2785 = vmatprep.mubr.msk.bf16.mxu0 %vm3218_vm2, %v3217_v2  ;;  %2789 = vmatprep.subr.bf16.mxu1 %v3217_v2 }
 0x58a   : > { %2795 = vmatprep.subr.bf16.mxu0 %v3217_v2 }
 0x58e   : > { %2780 = vmatmul.mubr.msk.bf16.vlgmr.msra.gmra.mrb[16].mxu1 %vm974_vm3, %v1440_v6 }
 0x58f   : > { %2786 = vmatmul.mubr.msk.bf16.vlgmr.msra.gmra.mrb[20].mxu0 %vm974_vm3, %v1490_v10  ;;  %2790 = vmatpush3.bf16.xpose.msra.mxu1 %v1547_v17 }
 0x590   : > { %2796 = vmatpush3.bf16.xpose.msra.mxu0 %v1597_v18  ;;  %2791 = vmatprep.mubr.msk.bf16.mxu1 %vm3218_vm2, %v3217_v2 }
 0x591   : > { %2797 = vmatprep.mubr.msk.bf16.mxu0 %vm3218_vm2, %v3217_v2  ;;  %2801 = vmatprep.subr.bf16.mxu1 %v3217_v2 }
 0x592   : > { %2807 = vmatprep.subr.bf16.mxu0 %v3217_v2 }
 0x596   : > { %2792 = vmatmul.mubr.msk.bf16.vlgmr.msra.gmra.mrb[20].mxu1 %vm974_vm3, %v1540_v19 }
 0x597   : > { %2798 = vmatmul.mubr.msk.bf16.vlgmr.msra.gmra.mrb[24].mxu0 %vm974_vm3, %v1590_v20  ;;  %2803 = vmatprep.mubr.msk.bf16.mxu1 %vm3218_vm2, %v3217_v2 }
 0x598   : > { %2809 = vmatprep.mubr.msk.bf16.mxu0 %vm3218_vm2, %v3217_v2 }
 0x620   : > { %v3698_v21 = vpop.f32.mrb[8].mxu1 }
 0x621   : > { %v2757_v22 = vpop.f32.mrb[9].mxu1 }
 0x622   : > { %v1292_v23 = vpop.f32.mrb[10].mxu1 }
 0x623   : > { %v2758_v24 = vpop.f32.mrb[11].mxu1 }
 0x624   : > { %v3700_v25 = vpop.f32.mrb[12].mxu0 }
 0x625   : > { %v2763_v26 = vpop.f32.mrb[13].mxu0 }
 0x626   : > { %v1340_v27 = vpop.f32.mrb[14].mxu0 }
 0x627   : > { %v2764_v28 = vpop.f32.mrb[15].mxu0 }
 0x659   : > { %v3702_v29 = vpop.f32.mrb[12].mxu1 }
 0x65a   : > { %v3704_v30 = vpop.f32.mrb[16].mxu0  ;;  %v2769_v31 = vpop.f32.mrb[13].mxu1 }
 0x65b   : > { %v2775_v32 = vpop.f32.mrb[17].mxu0  ;;  %v1388_v34 = vpop.f32.mrb[14].mxu1 }
 0x65c   : > { %v1436_v35 = vpop.f32.mrb[18].mxu0  ;;  %v2770_v36 = vpop.f32.mrb[15].mxu1 }
 0x65d   : > { %v2776_v37 = vpop.f32.mrb[19].mxu0 }
 0x661   : > { %v1483_v38 = vpop.f32.mrb[16].mxu1 }
 0x662   : > { %v1639_v39 = vmul.f32 0.25, %v1483_v38  ;;  %v1533_v40 = vpop.f32.mrb[20].mxu0  ;;  %v2781_v41 = vpop.f32.mrb[17].mxu1 }
 0x663   : > { %v1640_v42 = vmul.f32 0.25, %v1533_v40  ;;  %v2787_v44 = vpop.f32.mrb[21].mxu0  ;;  %v1486_v45 = vpop.f32.mrb[18].mxu1 }
 0x664   : > { %v1536_v46 = vpop.f32.mrb[22].mxu0  ;;  %v2782_v47 = vpop.f32.mrb[19].mxu1  ;;  %v1643_v48 = vadd.f32 %v1639_v39, %v3626_v33 }
 0x665   : > { %v2788_v49 = vpop.f32.mrb[23].mxu0  ;;  %v1644_v50 = vadd.f32 %v1640_v42, %v3629_v43 }
 0x666   : > { %v1647_v51 = vsel %vm1197_vm4, %v1643_v48, -inf }
 0x667   : > { %v1650_v52 = vsel %vm1197_vm4, %v1644_v50, -inf  ;;  %1648 = vmax.xlane.f32.xlu0 %v1647_v51 }
 0x668   : > { %1651 = vmax.xlane.f32.xlu1 %v1650_v52 }
 0x669   : > { %v1583_v54 = vpop.f32.mrb[20].mxu1 }
 0x66a   : > { %v1641_v55 = vmul.f32 0.25, %v1583_v54  ;;  %v1633_v56 = vpop.f32.mrb[24].mxu0  ;;  %v2793_v57 = vpop.f32.mrb[21].mxu1 }
 0x66b   : > { %v1642_v58 = vmul.f32 0.25, %v1633_v56  ;;  %v2799_v59 = vpop.f32.mrb[25].mxu0  ;;  %v1586_v63 = vpop.f32.mrb[22].mxu1  ;;  %v2970_v57 = vld [vmem:[%s3499_s19] sm:$0xff]  }
 0x66c   : > { %v1636_v1 = vpop.f32.mrb[26].mxu0  ;;  %v2794_v4 = vpop.f32.mrb[23].mxu1  ;;  %v1645_v33 = vadd.f32 %v1641_v55, %v3633_v53 }
 0x66d   : > { %v2800_v5 = vpop.f32.mrb[27].mxu0  ;;  %v1646_v6 = vadd.f32 %v1642_v58, %v3637_v3  ;;  %v2971_v4 = vld [vmem:[%s3499_s19 + $0x8] sm:$0xff]  }
 0x66e   : > { %v1653_v43 = vsel %vm1197_vm4, %v1645_v33, -inf }
 0x66f   : > { %1654 = vmax.xlane.f32.xlu0 %v1653_v43  ;;  %v1656_v7 = vsel %vm1197_vm4, %v1646_v6, -inf }
 0x673   : > { %1657 = vmax.xlane.f32.xlu0 %v1656_v7 }
 0x679   : > { %1695 = vrot.lane.b32.xlu1 %v3592_v12, %s3223_s21 }
 0x6f4   : > { %v1649_v8 = vpop.xlane.xlu0 %1648 }
 0x6f5   : > { %v1652_v10 = vpop.xlane.xlu1 %1651  ;;  %v1659_v11 = vsub.f32 %v1643_v48, %v1649_v8 }
 0x6f6   : > { %v1660_v13 = vsub.f32 %v1644_v50, %v1652_v10 }
 0x6f7   : > { %v1663_v16 = vmul.f32 1.442695, %v1659_v11 }
 0x6f8   : > { %v1665_v17 = vmul.f32 1.442695, %v1660_v13 }
 0x6f9   : > { %2994 = vpow2.f32 %v1663_v16  ;;  %v1696_v53 = vpop.permute.xlu1 %1695 }
 0x6fa   : > { %2996 = vpow2.f32 %v1665_v17  ;;  %v1701_v18 = vsel %vm1251_vm5, %v1696_v53, 0 }
 0x6fb   : > { %2802 = vmatpush3.bf16.msra.mxu1 %v1701_v18 }
 0x6fc   : > { %v1655_v3 = vpop.xlane.xlu0 %1654  ;;  %2813 = vmatprep.subr.bf16.mxu1 %v3217_v2 }
 0x6fd   : > { %v1661_v19 = vsub.f32 %v1645_v33, %v1655_v3 }
 0x6ff   : > { %v1667_v20 = vmul.f32 1.442695, %v1661_v19 }
 0x700   : > { %v1658_v22 = vpop.xlane.xlu0 %1657 }
 0x701   : > { %2998 = vpow2.f32 %v1667_v20  ;;  %v1662_v12 = vsub.f32 %v1646_v6, %v1658_v22 }
 0x703   : > { %v2995_v23 = vpop.eup %2994  ;;  %v1669_v24 = vmul.f32 1.442695, %v1662_v12 }
 0x704   : > { %v2997_v26 = vpop.eup %2996  ;;  %v1671_v27 = vsel %vm1197_vm4, %v2995_v23, 0.0 }
 0x705   : > { %3000 = vpow2.f32 %v1669_v24  ;;  %v1674_v28 = vsel %vm1197_vm4, %v2997_v26, 0.0  ;;  %1672 = vadd.xlane.f32.xlu1 %v1671_v27 }
 0x706   : > { %1675 = vadd.xlane.f32.xlu0 %v1674_v28 }
 0x70b   : > { %v2999_v31 = vpop.eup %2998 }
 0x70c   : > { %v1677_v32 = vsel %vm1197_vm4, %v2999_v31, 0.0 }
 0x70d   : > { %1678 = vadd.xlane.f32.xlu1 %v1677_v32 }
 0x70f   : > { %v3001_v34 = vpop.eup %3000 }
 0x710   : > { %v1680_v35 = vsel %vm1197_vm4, %v3001_v34, 0.0 }
 0x711   : > { %1681 = vadd.xlane.f32.xlu0 %v1680_v35 }
 0x71e   : > { %1791 = vrot.lane.b32.xlu1 %v3590_v9, %s3223_s21 }
 0x722   : > { %1839 = vrot.lane.b32.xlu1 %v3596_v14, %s3223_s21 }
 0x727   : > { %1743 = vrot.lane.b32.xlu0 %v3598_v15, %s3223_s21 }
 0x792   : > { %v1673_v36 = vpop.xlane.xlu1 %1672 }
 0x793   : > { %3002 = vrcp.f32 %v1673_v36  ;;  %v1676_v37 = vpop.xlane.xlu0 %1675 }
 0x794   : > { %3004 = vrcp.f32 %v1676_v37 }
 0x79a   : > { %v1679_v38 = vpop.xlane.xlu1 %1678 }
 0x79b   : > { %3006 = vrcp.f32 %v1679_v38 }
 0x79d   : > { %v3003_v39 = vpop.eup %3002 }
 0x79e   : > { %v3005_v40 = vpop.eup %3004  ;;  %v1687_v41 = vmul.f32 %v3003_v39, %v2995_v23  ;;  %v1792_v42 = vpop.permute.xlu1 %1791 }
 0x79f   : > { %v1682_v44 = vpop.xlane.xlu0 %1681  ;;  %v1688_v9 = vmul.f32 %v3005_v40, %v2997_v26  ;;  %v1797_v46 = vsel %vm1251_vm5, %v1792_v42, 0 }
 0x7a0   : > { %3008 = vrcp.f32 %v1682_v44  ;;  %v1691_v45 = vpack.c.bf16 %v1687_v41, %v1687_v41 }
 0x7a1   : > { %v1692_v49 = vpack.c.bf16 %v1688_v9, %v1688_v9 }
 0x7a2   : > { %2804 = vmatmul.mubr.msk.bf16.vlgmr.msra.gmra.mrb[24].mxu1 %vm1197_vm4, %v1691_v45  ;;  %v1840_v47 = vpop.permute.xlu1 %1839 }
 0x7a3   : > { %v1744_v14 = vpop.permute.xlu0 %1743  ;;  %2814 = vmatpush3.bf16.msra.mxu1 %v1797_v46  ;;  %2815 = vmatprep.mubr.msk.bf16.mxu1 %vm3218_vm2, %v3217_v2  ;;  %v1845_v51 = vsel %vm1251_vm5, %v1840_v47, 0 }
 0x7a4   : > { %v1749_v15 = vsel %vm1251_vm5, %v1744_v14, 0  ;;  %2825 = vmatprep.subr.bf16.mxu1 %v2970_v57 }
 0x7a5   : > { %2808 = vmatpush3.bf16.msra.mxu0 %v1749_v15  ;;  %v3007_v48 = vpop.eup %3006 }
 0x7a6   : > { %2819 = vmatprep.subr.bf16.mxu0 %v3217_v2  ;;  %v1689_v50 = vmul.f32 %v3007_v48, %v2999_v31 }
 0x7a8   : > { %2810 = vmatmul.mubr.msk.bf16.vlgmr.msra.gmra.mrb[28].mxu0 %vm1197_vm4, %v1692_v49  ;;  %v1693_v52 = vpack.c.bf16 %v1689_v50, %v1689_v50 }
 0x7a9   : > { %2820 = vmatpush3.bf16.msra.mxu0 %v1845_v51  ;;  %2821 = vmatprep.mubr.msk.bf16.mxu0 %vm3218_vm2, %v3217_v2 }
 0x7aa   : > { %v3009_v54 = vpop.eup %3008  ;;  %2816 = vmatmul.mubr.msk.bf16.vlgmr.msra.gmra.mrb[28].mxu1 %vm1197_vm4, %v1693_v52 }
 0x7ab   : > { %v1690_v55 = vmul.f32 %v3009_v54, %v3001_v34  ;;  %2826 = vmatpush3.bf16.msra.mxu1 %v2970_v57 }
 0x7ac   : > { %2827 = vmatprep.subr.bf16.mxu1 %v2971_v4 }
 0x7ad   : > { %v1694_v56 = vpack.c.bf16 %v1690_v55, %v1690_v55 }
 0x7af   : > { %2828 = vmatpush3.bf16.msra.mxu1 %v2971_v4  ;;  %v2972_v4 = vld [vmem:[%s3955_s8] sm:$0xff]  }
 0x7b0   : > { %2822 = vmatmul.mubr.msk.bf16.vlgmr.msra.gmra.mrb[32].mxu0 %vm1197_vm4, %v1694_v56  ;;  %2833 = vmatprep.subr.bf16.mxu0 %v2972_v4 }
 0x7b1   : > { %2834 = vmatpush3.bf16.msra.mxu0 %v2972_v4 }
 0x875   : > { %v1737_v58 = vpop.f32.mrb[24].mxu1 }
 0x876   : > { %v2805_v59 = vpop.f32.mrb[25].mxu1 }
 0x877   : > { %v1740_v63 = vpop.f32.mrb[26].mxu1 }
 0x878   : > { %v2806_v1 = vpop.f32.mrb[27].mxu1 }
 0x87b   : > { %v1785_v33 = vpop.f32.mrb[28].mxu0 }
 0x87c   : > { %v2958_v5 = vpack.i.bf16 %v1785_v33, %v1737_v58  ;;  %v2811_v43 = vpop.f32.mrb[29].mxu0  ;;  %v2973_v33 = vld [vmem:[%s3956_s18 + $0x8] sm:$0xff]  }
 0x87d   : > { %v1788_v2 = vpop.f32.mrb[30].mxu0  ;;  %v1833_v6 = vpop.f32.mrb[28].mxu1  ;;  %2835 = vmatprep.subr.bf16.mxu0 %v2973_v33 }
 0x87e   : > { %2959 = vrot.lane.b32.xlu0 %v2958_v5, %s3224_s23  ;;  %v2812_v7 = vpop.f32.mrb[31].mxu0  ;;  %v2817_v8 = vpop.f32.mrb[29].mxu1  ;;  %2836 = vmatpush3.bf16.msra.mxu0 %v2973_v33 }
 0x87f   : > { %v1836_v10 = vpop.f32.mrb[30].mxu1 }
 0x880   : > { %v2818_v11 = vpop.f32.mrb[31].mxu1 }
 0x883   : > { %v1881_v13 = vpop.f32.mrb[32].mxu0 }
 0x884   : > { %v2963_v16 = vpack.i.bf16 %v1881_v13, %v1833_v6  ;;  %v2823_v17 = vpop.f32.mrb[33].mxu0 }
 0x885   : > { %v1884_v53 = vpop.f32.mrb[34].mxu0 }
 0x886   : > { %2964 = vrot.lane.b32.xlu1 %v2963_v16, %s3224_s23  ;;  %v2824_v18 = vpop.f32.mrb[35].mxu0 }
 0x8f0   : > { %v2960_v3 = vpop.permute.xlu0 %2959 }
 0x8f1   : > { %v2962_v19 = vunpack.i.h.bf16 %v2960_v3  ;;  %v2961_v20 = vunpack.i.l.bf16 %v2960_v3  ;;  %v2642_v3 = vld [vmem:[%s3958_s3] ss:$0 sm:$0xff] }
 0x8f3   : > { %v1904_v22 = vsel %vm974_vm3, %v3700_v25, %v2962_v19  ;;  %v1903_v12 = vsel %vm974_vm3, %v3698_v21, %v2961_v20  ;;  %v2637_v21 = vld [vmem:[%s3954_s15] ss:$0 sm:$0xff] }
 0x8f4   : > { %v1907_v23 = vpack.c.bf16 %v1904_v22, %v1903_v12 }
 0x8f6   : > { %2829 = vmatprep.mubr.msk.bf16.mxu1 %vm904_vm1, %v1907_v23 }
 0x8f8   : > { %v2965_v24 = vpop.permute.xlu1 %2964 }
 0x8f9   : > { %v2967_v26 = vunpack.i.h.bf16 %v2965_v24  ;;  %v2966_v27 = vunpack.i.l.bf16 %v2965_v24  ;;  %v2643_v24 = vld [vmem:[%s3960_s28] ss:$0 sm:$0xff] }
 0x8fb   : > { %v1906_v28 = vsel %vm974_vm3, %v3704_v30, %v2967_v26  ;;  %v1905_v31 = vsel %vm974_vm3, %v3702_v29, %v2966_v27 }
 0x8fc   : > { %v1908_v32 = vpack.c.bf16 %v1906_v28, %v1905_v31 }
 0x8fe   : > { %2830 = vmatmul.mubr.msk.bf16.vlgmr.msra.gmra.mrb[32].mxu1 %vm904_vm1, %v1908_v32 }
 0x9d1   : > { %v2831_v25 = vpop.f32.mrb[32].mxu1 }
 0x9d2   : > { %v1972_v34 = vpop.f32.mrb[33].mxu1  ;;  %v1981_v35 = vadd.f32 %v2831_v25, %v2637_v21 }
 0x9d3   : > { %v1973_v36 = vadd.f32 %v2637_v21, %v1972_v34  ;;  %v2832_v37 = vpop.f32.mrb[34].mxu1 }
 0x9d4   : > { %v1975_v38 = vpop.f32.mrb[35].mxu1  ;;  %v1984_v40 = vadd.f32 %v2832_v37, %v2637_v21  ;;  %v1989_v42 = vadd.f32 %v1981_v35, %v3569_v62 }
 0x9d5   : > { %v1976_v39 = vadd.f32 %v2637_v21, %v1975_v38  ;;  %v1987_v30 = vadd.f32 %v1973_v36, %v3565_v60 }
 0x9d6   : > { %v1999_v45 = vsel %vm904_vm1, %v1989_v42, 0.0  ;;  %v1990_v9 = vadd.f32 %v1984_v40, %v3573_v0  ;;  %v2976_v40 = vld [vmem:[%s3525_s29 + $0x10] sm:$0xff]  }
 0x9d7   : > { %v1993_v29 = vsel %vm904_vm1, %v1987_v30, 0.0  ;;  %v1988_v41 = vadd.f32 %v1976_v39, %v3567_v61  ;;  %v2974_v39 = vld [vmem:[%s3525_s29] sm:$0xff]  }
 0x9d8   : > { %1994 = vadd.xlane.f32.xlu0 %v1993_v29  ;;  %v2002_v46 = vsel %vm904_vm1, %v1990_v9, 0.0  ;;  %2841 = vmatprep.subr.bf16.mxu1 %v2974_v39  ;;  %v2977_v29 = vld [vmem:[%s3525_s29 + $0x18] sm:$0xff]  }
 0x9d9   : > { %v1996_v44 = vsel %vm904_vm1, %v1988_v41, 0.0  ;;  %2842 = vmatpush3.bf16.msra.mxu1 %v2974_v39 }
 0x9da   : > { %1997 = vadd.xlane.f32.xlu1 %v1996_v44 }
 0x9dc   : > { %2000 = vadd.xlane.f32.xlu0 %v1999_v45 }
 0x9e0   : > { %2003 = vadd.xlane.f32.xlu0 %v2002_v46 }
 0xa65   : > { %v1995_v60 = vpop.xlane.xlu0 %1994 }
 0xa66   : > { %v2006_v14 = vmul.f32 0.03125, %v1995_v60 }
 0xa67   : > { %v1998_v15 = vpop.xlane.xlu1 %1997 }
 0xa68   : > { %v2010_v47 = vsub.f32 %v1987_v30, %v2006_v14  ;;  %v2007_v48 = vmul.f32 0.03125, %v1998_v15  ;;  %v2975_v30 = vld [vmem:[%s3525_s29 + $0x8] sm:$0xff]  }
 0xa69   : > { %v2001_v61 = vpop.xlane.xlu0 %2000  ;;  %2843 = vmatprep.subr.bf16.mxu1 %v2975_v30 }
 0xa6a   : > { %v2011_v49 = vsub.f32 %v1988_v41, %v2007_v48  ;;  %v2008_v62 = vmul.f32 0.03125, %v2001_v61  ;;  %v2014_v50 = vmul.f32 %v2010_v47, %v2010_v47  ;;  %2844 = vmatpush3.bf16.msra.mxu1 %v2975_v30  ;;  %v2644_v41 = vld [vmem:[%s758_s25] ss:$0 sm:$0xff] }
 0xa6b   : > { %2845 = vmatprep.subr.bf16.mxu1 %v2976_v40 }
 0xa6c   : > { %v2012_v51 = vsub.f32 %v1989_v42, %v2008_v62  ;;  %v2018_v52 = vsel %vm904_vm1, %v2014_v50, 0.0  ;;  %v2015_v54 = vmul.f32 %v2011_v49, %v2011_v49 }
 0xa6d   : > { %2019 = vadd.xlane.f32.xlu1 %v2018_v52  ;;  %v2004_v0 = vpop.xlane.xlu0 %2003 }
 0xa6e   : > { %v2009_v55 = vmul.f32 0.03125, %v2004_v0  ;;  %v2021_v56 = vsel %vm904_vm1, %v2015_v54, 0.0  ;;  %v2016_v57 = vmul.f32 %v2012_v51, %v2012_v51  ;;  %2846 = vmatpush3.bf16.msra.mxu1 %v2976_v40 }
 0xa6f   : > { %2022 = vadd.xlane.f32.xlu0 %v2021_v56  ;;  %2847 = vmatprep.subr.bf16.mxu1 %v2977_v29 }
 0xa70   : > { %v2013_v58 = vsub.f32 %v1990_v9, %v2009_v55  ;;  %v2024_v59 = vsel %vm904_vm1, %v2016_v57, 0.0 }
 0xa71   : > { %2025 = vadd.xlane.f32.xlu1 %v2024_v59 }
 0xa72   : > { %v2017_v63 = vmul.f32 %v2013_v58, %v2013_v58  ;;  %2848 = vmatpush3.bf16.msra.mxu1 %v2977_v29 }
 0xa74   : > { %v2027_v1 = vsel %vm904_vm1, %v2017_v63, 0.0 }
 0xa75   : > { %2028 = vadd.xlane.f32.xlu0 %v2027_v1 }
 0xafa   : > { %v2020_v5 = vpop.xlane.xlu1 %2019 }
 0xafb   : > { %v2030_v43 = vmul.f32 0.03125, %v2020_v5 }
 0xafc   : > { %v2023_v2 = vpop.xlane.xlu0 %2022 }
 0xafd   : > { %v2034_v6 = vadd.f32 1e-05, %v2030_v43  ;;  %v2031_v7 = vmul.f32 0.03125, %v2023_v2 }
 0xafe   : > { %v2026_v8 = vpop.xlane.xlu1 %2025 }
 0xaff   : > { %3010 = vrsqrt.f32 %v2034_v6  ;;  %v2035_v10 = vadd.f32 1e-05, %v2031_v7  ;;  %v2032_v11 = vmul.f32 0.03125, %v2026_v8 }
 0xb01   : > { %3012 = vrsqrt.f32 %v2035_v10  ;;  %v2036_v13 = vadd.f32 1e-05, %v2032_v11 }
 0xb02   : > { %v2029_v16 = vpop.xlane.xlu0 %2028 }
 0xb03   : > { %3014 = vrsqrt.f32 %v2036_v13  ;;  %v2033_v17 = vmul.f32 0.03125, %v2029_v16 }
 0xb05   : > { %v2037_v53 = vadd.f32 1e-05, %v2033_v17 }
 0xb07   : > { %3016 = vrsqrt.f32 %v2037_v53 }
 0xb09   : > { %v3011_v18 = vpop.eup %3010 }
 0xb0a   : > { %v2042_v19 = vmul.f32 %v3011_v18, %v2010_v47 }
 0xb0b   : > { %v3013_v20 = vpop.eup %3012 }
 0xb0c   : > { %v2043_v22 = vmul.f32 %v3013_v20, %v2011_v49  ;;  %v2052_v12 = vmul.f32 %v2642_v3, %v2042_v19 }
 0xb0d   : > { %v3015_v23 = vpop.eup %3014 }
 0xb0e   : > { %v2044_v26 = vmul.f32 %v3015_v23, %v2012_v51  ;;  %v2053_v27 = vmul.f32 %v2642_v3, %v2043_v22  ;;  %v3783_v28 = vadd.f32 %v2643_v24, %v2052_v12 }
 0xb10   : > { %v3785_v31 = vadd.f32 %v2643_v24, %v2053_v27  ;;  %v2054_v21 = vmul.f32 %v2642_v3, %v2044_v26 }
 0xb11   : > { %v3017_v32 = vpop.eup %3016 }
 0xb12   : > { %v2045_v25 = vmul.f32 %v3017_v32, %v2013_v58  ;;  %v2066_v34 = vpack.c.bf16 %v3785_v31, %v3783_v28  ;;  %v3790_v36 = vadd.f32 %v2643_v24, %v2054_v21 }
 0xb14   : > { %v2055_v35 = vmul.f32 %v2642_v3, %v2045_v25  ;;  %2837 = vmatprep.mubr.msk.bf16.mxu0 %vm904_vm1, %v2066_v34 }
 0xb16   : > { %v3792_v37 = vadd.f32 %v2643_v24, %v2055_v35  ;;  %v2649_v24 = vld [vmem:[%s766_s6] ss:$0 sm:$0xff] }
 0xb18   : > { %v2067_v38 = vpack.c.bf16 %v3792_v37, %v3790_v36 }
 0xb1a   : > { %2838 = vmatmul.mubr.msk.bf16.vlgmr.msra.gmra.mrb[36].mxu0 %vm904_vm1, %v2067_v38 }
 0xbed   : > { %v2839_v42 = vpop.f32.mrb[36].mxu0 }
 0xbee   : > { %v2140_v44 = vadd.f32 %v2839_v42, %v2644_v41  ;;  %v2131_v45 = vpop.f32.mrb[37].mxu0 }
 0xbef   : > { %v2132_v9 = vadd.f32 %v2644_v41, %v2131_v45  ;;  %v2840_v46 = vpop.f32.mrb[38].mxu0 }
 0xbf0   : > { %v2148_v60 = vmul.f32 %v2140_v44, %v2140_v44  ;;  %v2143_v14 = vadd.f32 %v2840_v46, %v2644_v41  ;;  %v2134_v15 = vpop.f32.mrb[39].mxu0 }
 0xbf1   : > { %v2146_v47 = vmul.f32 %v2132_v9, %v2132_v9  ;;  %v2135_v48 = vadd.f32 %v2644_v41, %v2134_v15 }
 0xbf2   : > { %v2152_v61 = vmul.f32 %v2148_v60, %v2140_v44  ;;  %v2149_v49 = vmul.f32 %v2143_v14, %v2143_v14 }
 0xbf3   : > { %v2150_v62 = vmul.f32 %v2146_v47, %v2132_v9  ;;  %v2147_v50 = vmul.f32 %v2135_v48, %v2135_v48 }
 0xbf4   : > { %v2156_v51 = vmul.f32 0.044715, %v2152_v61  ;;  %v2153_v52 = vmul.f32 %v2149_v49, %v2143_v14 }
 0xbf5   : > { %v2154_v54 = vmul.f32 0.044715, %v2150_v62  ;;  %v2151_v0 = vmul.f32 %v2147_v50, %v2135_v48 }
 0xbf6   : > { %v2160_v55 = vadd.f32 %v2156_v51, %v2140_v44  ;;  %v2157_v56 = vmul.f32 0.044715, %v2153_v52 }
 0xbf7   : > { %v2158_v57 = vadd.f32 %v2154_v54, %v2132_v9  ;;  %v2155_v58 = vmul.f32 0.044715, %v2151_v0 }
 0xbf8   : > { %v2164_v59 = vmul.f32 0.7978846, %v2160_v55  ;;  %v2161_v63 = vadd.f32 %v2157_v56, %v2143_v14 }
 0xbf9   : > { %v2162_v1 = vmul.f32 0.7978846, %v2158_v57  ;;  %v2159_v4 = vadd.f32 %v2155_v58, %v2135_v48 }
 0xbfa   : > { %3018 = vtanh.f32 %v2164_v59  ;;  %v2165_v33 = vmul.f32 0.7978846, %v2161_v63 }
 0xbfb   : > { %3020 = vtanh.f32 %v2162_v1  ;;  %v2163_v5 = vmul.f32 0.7978846, %v2159_v4 }
 0xbfc   : > { %3022 = vtanh.f32 %v2165_v33 }
 0xbfd   : > { %3024 = vtanh.f32 %v2163_v5 }
 0xc04   : > { %v3019_v43 = vpop.eup %3018 }
 0xc05   : > { %v3021_v2 = vpop.eup %3020  ;;  %v2172_v6 = vadd.f32 1.0, %v3019_v43 }
 0xc06   : > { %v3023_v7 = vpop.eup %3022  ;;  %v2170_v8 = vadd.f32 1.0, %v3021_v2 }
 0xc07   : > { %v3025_v10 = vpop.eup %3024  ;;  %v2176_v11 = vmul.f32 0.5, %v2172_v6  ;;  %v2173_v13 = vadd.f32 1.0, %v3023_v7 }
 0xc08   : > { %v2174_v16 = vmul.f32 0.5, %v2170_v8  ;;  %v2171_v17 = vadd.f32 1.0, %v3025_v10  ;;  %v2656_v8 = vld [vmem:[%s769_s10] ss:$0 sm:$0xff] }
 0xc09   : > { %v2177_v53 = vmul.f32 0.5, %v2173_v13  ;;  %v2180_v3 = vmul.f32 %v2176_v11, %v2140_v44  ;;  %v2657_v13 = vld [vmem:[%s772_s9] ss:$0 sm:$0xff] }
 0xc0a   : > { %v2175_v18 = vmul.f32 0.5, %v2171_v17  ;;  %v2178_v20 = vmul.f32 %v2174_v16, %v2132_v9 }
 0xc0b   : > { %v2181_v19 = vmul.f32 %v2177_v53, %v2143_v14 }
 0xc0c   : > { %v2179_v22 = vmul.f32 %v2175_v18, %v2135_v48 }
 0xc0d   : > { %v2183_v12 = vpack.c.bf16 %v2181_v19, %v2180_v3 }
 0xc0e   : > { %v2182_v23 = vpack.c.bf16 %v2179_v22, %v2178_v20 }
 0xc10   : > { %2849 = vmatprep.mubr.msk.bf16.mxu1 %vm2223_vm6, %v2182_v23 }
 0xc11   : > { %2850 = vmatmul.mubr.msk.bf16.vlgmr.msra.gmra.mrb[36].mxu1 %vm2223_vm6, %v2183_v12 }
 0xce4   : > { %v2851_v26 = vpop.f32.mrb[36].mxu1 }
 0xce5   : > { %v2264_v27 = vpop.f32.mrb[37].mxu1  ;;  %v2273_v32 = vadd.f32 %v2851_v26, %v2649_v24 }
 0xce6   : > { %v2265_v21 = vadd.f32 %v2649_v24, %v2264_v27  ;;  %v2852_v25 = vpop.f32.mrb[38].mxu1 }
 0xce7   : > { %v2267_v34 = vpop.f32.mrb[39].mxu1  ;;  %v2276_v35 = vadd.f32 %v2852_v25, %v2649_v24  ;;  %v2281_v29 = vadd.f32 %v2273_v32, %v3790_v36 }
 0xce8   : > { %v2268_v38 = vadd.f32 %v2649_v24, %v2267_v34  ;;  %v2279_v39 = vadd.f32 %v2265_v21, %v3783_v28 }
 0xce9   : > { %v2282_v42 = vadd.f32 %v2276_v35, %v3792_v37  ;;  %v2291_v44 = vsel %vm904_vm1, %v2281_v29, 0.0 }
 0xcea   : > { %v2285_v30 = vsel %vm904_vm1, %v2279_v39, 0.0  ;;  %v2280_v40 = vadd.f32 %v2268_v38, %v3785_v31 }
 0xceb   : > { %2286 = vadd.xlane.f32.xlu1 %v2285_v30  ;;  %v2294_v45 = vsel %vm904_vm1, %v2282_v42, 0.0 }
 0xcec   : > { %v2288_v41 = vsel %vm904_vm1, %v2280_v40, 0.0 }
 0xced   : > { %2289 = vadd.xlane.f32.xlu0 %v2288_v41 }
 0xcef   : > { %2292 = vadd.xlane.f32.xlu1 %v2291_v44 }
 0xcf1   : > { %2295 = vadd.xlane.f32.xlu0 %v2294_v45 }
 0xd78   : > { %v2287_v9 = vpop.xlane.xlu1 %2286 }
 0xd79   : > { %v2297_v28 = vmul.f32 0.03125, %v2287_v9 }
 0xd7a   : > { %v2290_v46 = vpop.xlane.xlu0 %2289 }
 0xd7b   : > { %v2301_v60 = vsub.f32 %v2279_v39, %v2297_v28  ;;  %v2298_v14 = vmul.f32 0.03125, %v2290_v46 }
 0xd7c   : > { %v2293_v31 = vpop.xlane.xlu1 %2292 }
 0xd7d   : > { %v2302_v15 = vsub.f32 %v2280_v40, %v2298_v14  ;;  %v2299_v36 = vmul.f32 0.03125, %v2293_v31  ;;  %v2305_v47 = vmul.f32 %v2301_v60, %v2301_v60 }
 0xd7e   : > { %v2296_v48 = vpop.xlane.xlu0 %2295 }
 0xd7f   : > { %v2303_v61 = vsub.f32 %v2281_v29, %v2299_v36  ;;  %v2300_v49 = vmul.f32 0.03125, %v2296_v48  ;;  %v2309_v37 = vsel %vm904_vm1, %v2305_v47, 0.0  ;;  %v2306_v62 = vmul.f32 %v2302_v15, %v2302_v15 }
 0xd80   : > { %2310 = vadd.xlane.f32.xlu1 %v2309_v37 }
 0xd81   : > { %v2304_v50 = vsub.f32 %v2282_v42, %v2300_v49  ;;  %v2312_v51 = vsel %vm904_vm1, %v2306_v62, 0.0  ;;  %v2307_v52 = vmul.f32 %v2303_v61, %v2303_v61 }
 0xd82   : > { %2313 = vadd.xlane.f32.xlu0 %v2312_v51 }
 0xd83   : > { %v2315_v54 = vsel %vm904_vm1, %v2307_v52, 0.0  ;;  %v2308_v0 = vmul.f32 %v2304_v50, %v2304_v50 }
 0xd84   : > { %2316 = vadd.xlane.f32.xlu1 %v2315_v54 }
 0xd85   : > { %v2318_v55 = vsel %vm904_vm1, %v2308_v0, 0.0 }
 0xd86   : > { %2319 = vadd.xlane.f32.xlu0 %v2318_v55 }
 0xe0d   : > { %v2311_v56 = vpop.xlane.xlu1 %2310 }
 0xe0e   : > { %v2321_v57 = vmul.f32 0.03125, %v2311_v56 }
 0xe0f   : > { %v2314_v58 = vpop.xlane.xlu0 %2313 }
 0xe10   : > { %v2325_v59 = vadd.f32 1e-05, %v2321_v57  ;;  %v2322_v63 = vmul.f32 0.03125, %v2314_v58 }
 0xe11   : > { %v2317_v1 = vpop.xlane.xlu1 %2316 }
 0xe12   : > { %3026 = vrsqrt.f32 %v2325_v59  ;;  %v2326_v4 = vadd.f32 1e-05, %v2322_v63  ;;  %v2323_v33 = vmul.f32 0.03125, %v2317_v1 }
 0xe13   : > { %v2320_v5 = vpop.xlane.xlu0 %2319 }
 0xe14   : > { %3028 = vrsqrt.f32 %v2326_v4  ;;  %v2327_v43 = vadd.f32 1e-05, %v2323_v33  ;;  %v2324_v2 = vmul.f32 0.03125, %v2320_v5 }
 0xe16   : > { %3030 = vrsqrt.f32 %v2327_v43  ;;  %v2328_v6 = vadd.f32 1e-05, %v2324_v2 }
 0xe18   : > { %3032 = vrsqrt.f32 %v2328_v6 }
 0xe1c   : > { %v3027_v7 = vpop.eup %3026 }
 0xe1d   : > { %v2333_v10 = vmul.f32 %v3027_v7, %v2301_v60 }
 0xe1e   : > { %v3029_v11 = vpop.eup %3028 }
 0xe1f   : > { %v2343_v16 = vmul.f32 %v2656_v8, %v2333_v10  ;;  %v2334_v17 = vmul.f32 %v3029_v11, %v2302_v15 }
 0xe20   : > { %v3031_v53 = vpop.eup %3030 }
 0xe21   : > { %v2353_v18 = vadd.f32 %v2657_v13, %v2343_v16  ;;  %v2344_v3 = vmul.f32 %v2656_v8, %v2334_v17  ;;  %v2335_v19 = vmul.f32 %v3031_v53, %v2303_v61 }
 0xe22   : > { %v3033_v20 = vpop.eup %3032 }
 0xe23   : > { %2357 = vst.msk [vmem:[#allocation2] sm:$0xff] %vm904_vm1, %v2353_v18  ;;  %v2354_v22 = vadd.f32 %v2657_v13, %v2344_v3  ;;  %v2345_v12 = vmul.f32 %v2656_v8, %v2335_v19  ;;  %v2336_v23 = vmul.f32 %v3033_v20, %v2304_v50  ;;  %2364 = sbr.rel (%p2658_p0) target bundleno = 3626 (0xe2a), region = 104  ;;  %2365 = vst.msk [vmem:[#allocation9] sm:$0xff] (!%p2658_p0), %vm904_vm1, %v2353_v18 }
 0xe25   : > { %2358 = vst.msk [vmem:[#allocation2 + $0x8] sm:$0xff] %vm904_vm1, %v2354_v22  ;;  %v2355_v24 = vadd.f32 %v2657_v13, %v2345_v12  ;;  %v2346_v26 = vmul.f32 %v2656_v8, %v2336_v23  ;;  %2366 = vst.msk [vmem:[#allocation9 + $0x8] sm:$0xff] (!%p2658_p0), %vm904_vm1, %v2354_v22 }
 0xe27   : > { %2359 = vst.msk [vmem:[#allocation2 + $0x10] sm:$0xff] %vm904_vm1, %v2355_v24  ;;  %v2356_v27 = vadd.f32 %v2657_v13, %v2346_v26  ;;  %2367 = vst.msk [vmem:[#allocation9 + $0x10] sm:$0xff] (!%p2658_p0), %vm904_vm1, %v2355_v24 }
 0xe29   : > { %2360 = vst.msk [vmem:[#allocation2 + $0x18] sm:$0xff] %vm904_vm1, %v2356_v27  ;;  %2368 = vst.msk [vmem:[#allocation9 + $0x18] sm:$0xff] (!%p2658_p0), %vm904_vm1, %v2356_v27 }
 0xe2a PF: > { %p2883_p3 = scmp.eq.s32.totalorder %s3342_s27, 1  ;;  %s3225_s10 = smov [#allocation9]  }
 0xe2b   : > { %s2378_s9 = sshll.u32 %s3225_s10, 4  ;;  %s2379_s9 = int_to_ptr.vmem [resolvable:$true] %s2378_s9 }
 0xe2c   : > { %s3120_s2 = scalar_lea.vmem %s2379_s9, 512  ;;  %p3127_p2 = scmp.lt.s32.totalorder %s2379_s9, %s2379_s9 }
 0xe2d   : > { %p3121_p10 = scmp.ne.s32.totalorder %s2379_s9, %s3120_s2  ;;  %p3128_p8 = scmp.lt.s32.totalorder %s3120_s2, %s3120_s2 }
 0xe2f   : > { %p3122_p12 = pnand %p3121_p10, %p2883_p3  ;;  %p3129_p13 = por %p3128_p8, %p3127_p2 }
 0xe31   : > { %p3123_p1 = pneg %p3122_p12 }
 0xe33   : > { %p3130_p4 = pnand %p3129_p13, %p3123_p1 }
 0xe35   : > { %3133 = shalt.err (!%p3130_p4)
}
 0xe36   : > { %s3965_s0 = sld [smem:[#allocation32_spill]] }
 0xe3c   : > { %s3134_s14 = scalar_lea.hbm %s3965_s0, 512 }
 0xe3d   : > { %p3135_p5 = scmp.ne.s32.totalorder %s3965_s0, %s3134_s14  ;;  %p3140_p9 = scmp.lt.u32.totalorder %s3134_s14, %s3965_s0 }
 0xe3f   : > { %p3136_p6 = pnand %p3135_p5, %p2883_p3 }
 0xe41   : > { %p3137_p7 = pneg %p3136_p6 }
 0xe43   : > { %p3142_p11 = pnand %p3140_p9, %p3137_p7 }
 0xe45   : > { %3145 = shalt.err (!%p3142_p11)
}
 0xe46   : > { %s3226_s17 = smov 128   ;;  %s3227_s28 = smov 8  }
 0xe47   : > { %2864 = dma.vmem_to_hbm [thread:$0]  (%p2883_p3), %s2379_s9, 512, %s3965_s0, [#allocation5], %s3226_s17, %s3226_s17, %s3227_s28  }
 0xe48   : > { %3183 = dma.done.wait (%p2883_p3), [#allocation5], 512  }
 0xe49   : > { %3185 = vsyncadd (%p2883_p3), [#allocation5], 4294966784 }
 0xe4a PF: > { %s29_s26 = sadd.s32 1, %s3208_s26   ;;  %s3966_s13 = sld [smem:[#allocation14_spill]] }
 0xe4b   : > { %p26_p0 = scmp.ge.s32.totalorder %s29_s26, 4   ;;  %s3967_s23 = sld [smem:[#allocation17_spill]] }
 0xe4c   : > { %s3968_s24 = sld [smem:[#allocation15_spill]]  ;;  %s3969_s25 = sld [smem:[#allocation16_spill]] }
 0xe4d   : > { %s3970_s21 = smov %s3192_s22  ;;  %28 = sbr.rel (!%p26_p0) target bundleno = 21 (0x15), region = 174 }
 0xe50   : > { %s3971_s22 = smov %s3966_s13 }
 0xe54   :  { %2394 = vsyncpa [#allocation4], 1 }
 0xe55   :  { %2396 = vsyncpa [#allocation4 + $0x1], 1 }
 0xe56   :  { %2397 = vsyncpa [#allocation7], 1 }
 0xe57   :  { %2398 = vsyncpa [#allocation5], 1 }
 0xe58   :  { %2400 = vsyncpa [#allocation5 + $0x1], 1 }

</bundles_post_ra>
